<compile_context>
chip_gen: v7x
topology: tpu7x:2x2x1
jax: 0.10.0
libtpu: 0.0.40
codegen_flags: <defaults>
</compile_context>

<pallas_src>
import math

import jax
import jax.numpy as jnp
from jax.experimental import pallas as pl
from jax.experimental.pallas import tpu as pltpu


def make_self_attention_kernel(tb, seq, hidden_p, matmul_dtype):
    """Kernel over a (tb*seq, hidden_p) row slab of x (tb batches per grid step)."""
    f32 = jnp.float32
    exact = jnp.dtype(matmul_dtype) == jnp.dtype(jnp.float32)
    # Full-precision MXU passes only matter for f32 inputs; bf16 is native rate.
    prec = jax.lax.Precision.HIGHEST if exact else None

    def kernel(x_ref, wqkv_ref, bqkv_ref, o_ref):
        rows = tb * seq
        # Fused projection: one MXU matmul (M=tb*S, K=Hp, N=3*Hp), f32 accumulation,
        # f32 bias.  The 1/sqrt(H) scale is already folded into the query columns.
        x = x_ref[...]                                            # (rows, Hp) matmul_dtype
        qkv = jnp.dot(x, wqkv_ref[...], preferred_element_type=f32,
                      precision=prec) + bqkv_ref[...]             # (rows, 3*Hp) f32

        # q/k/v segments start at 128-lane-aligned column offsets 0, Hp, 2*Hp.
        q = qkv[:, :hidden_p].reshape(tb, seq, hidden_p)
        k = qkv[:, hidden_p:2 * hidden_p].reshape(tb, seq, hidden_p)
        v = qkv[:, 2 * hidden_p:].reshape(tb, seq, hidden_p)

        # Batched attention scores (already scaled); MXU inputs in matmul_dtype,
        # accumulation in f32.
        scores = jnp.einsum("bqd,bkd->bqk",
                            q.astype(matmul_dtype), k.astype(matmul_dtype),
                            preferred_element_type=f32, precision=prec)

        # Numerically stable softmax statistics in f32; normalization deferred.
        m = jnp.max(scores, axis=-1, keepdims=True)
        p = jnp.exp(scores - m)
        l = jnp.sum(p, axis=-1, keepdims=True)                    # (tb, S, 1)

        out = jnp.einsum("bqk,bkd->bqd",
                         p.astype(matmul_dtype), v.astype(matmul_dtype),
                         preferred_element_type=f32, precision=prec)
        # Exact reciprocal: the approximate EUP variant caused the earlier
        # tolerance failure, and this divide is off the MXU critical path.
        out = out * pl.reciprocal(l, approx=False)
        o_ref[...] = out.reshape(rows, hidden_p).astype(o_ref.dtype)

    return kernel


def _round_up(n, m):
    return ((n + m - 1) // m) * m


def _kernel_vmem_bytes(tb, seq, hp, in_bytes):
    """Rough per-step VMEM footprint used to size the batch block."""
    rows = tb * seq
    return (2 * rows * hp * in_bytes      # double-buffered x slab
            + 2 * rows * hp * 4           # double-buffered f32 output slab
            + hp * 3 * hp * in_bytes      # weight slab (single-buffered when large)
            + 3 * hp * 4                  # f32 bias
            + rows * 3 * hp * 4           # f32 qkv projection result
            + rows * 3 * hp * in_bytes    # low-precision q/k/v operands for the MXU
            + 2 * tb * seq * seq * 4      # scores + exp(scores) in f32
            + rows * hp * 4)              # f32 output temporary


def _pick_batch_block(batch, seq, hidden_p, in_bytes, *,
                      vmem_budget=28 << 20, max_rows=512):
    """Largest batch block that divides `batch`, keeps tb*seq a multiple of 8,
    fits the VMEM budget, and leaves >= 2 grid steps for v7x's two TensorCores."""
    cap = max(1, batch // 2)
    best = None
    for d in range(1, cap + 1):
        if batch % d:
            continue
        if d * seq > max_rows or (d * seq) % 8:
            continue
        if _kernel_vmem_bytes(d, seq, hidden_p, in_bytes) > vmem_budget:
            continue
        best = d
    if best is None:
        # Smallest sublane-legal divisor; a block equal to the full array is
        # always legal as a last resort.
        for d in range(1, batch + 1):
            if batch % d == 0 and (d * seq) % 8 == 0:
                return d
        return batch
    return best


def self_attention(x, wq, bq, wk, bk, wv, bv, *,
                   matmul_dtype=jnp.bfloat16, batch_block=None):
    """Pallas equivalent of SelfAttentionLayer.forward: softmax(q k^T / sqrt(H)) v."""
    B, S, H = x.shape
    scale = 1.0 / math.sqrt(float(H))
    Hp = _round_up(H, 128)                 # lane-pad the feature dimension
    in_bytes = jnp.dtype(matmul_dtype).itemsize

    # Host-side weight prep (f32, done once):
    #  * torch Linear stores (out, in); transpose to (in, out) so the kernel
    #    computes x @ W directly,
    #  * fold the 1/sqrt(H) softmax scale into the query projection,
    #  * zero-pad each head to (Hp, Hp) so q/k/v start on 128-lane boundaries,
    #  * fuse into one (Hp, 3*Hp) slab; cast only the slab to the MXU dtype
    #    (bias stays f32 and is added to the f32 accumulator).
    def prep_w(w):
        wt = w.astype(jnp.float32).T
        return jnp.pad(wt, ((0, Hp - H), (0, Hp - H)))

    def prep_b(b):
        return jnp.pad(b.astype(jnp.float32), (0, Hp - H))

    wqkv = jnp.concatenate([prep_w(wq * scale), prep_w(wk), prep_w(wv)], axis=1)
    wqkv = wqkv.astype(matmul_dtype)                             # (Hp, 3*Hp)
    bqkv = jnp.concatenate([prep_b(bq * scale), prep_b(bk), prep_b(bv)])
    bqkv = bqkv.reshape(1, 3 * Hp)                               # (1, 3*Hp) f32

    if batch_block is None:
        batch_block = _pick_batch_block(B, S, Hp, in_bytes)
    tb = batch_block
    assert B % tb == 0, "batch_block must divide batch"
    rows = tb * S
    grid = (B // tb,)

    # Collapse batch into the matmul M dim; lane-pad; cast MXU input dtype.
    x2 = x.reshape(B * S, H)
    if Hp != H:
        x2 = jnp.pad(x2, ((0, 0), (0, Hp - H)))
    x2 = x2.astype(matmul_dtype)

    # Single-buffer the never-changing weight/bias blocks once the slab is big
    # enough that default double-buffering wastes meaningful VMEM.
    const_kwargs = {}
    if Hp * 3 * Hp * in_bytes >= (1 << 20):
        const_kwargs["pipeline_mode"] = pl.Buffered(1)

    cost = pl.CostEstimate(
        flops=2 * B * S * Hp * 3 * Hp + 4 * B * S * S * Hp,
        transcendentals=B * S * S,
        bytes_accessed=(B * S * Hp * in_bytes + Hp * 3 * Hp * in_bytes
                        + 3 * Hp * 4 + B * S * Hp * x.dtype.itemsize),
    )

    out2 = pl.pallas_call(
        make_self_attention_kernel(tb, S, Hp, matmul_dtype),
        out_shape=jax.ShapeDtypeStruct((B * S, Hp), x.dtype),
        grid_spec=pltpu.PrefetchScalarGridSpec(
            num_scalar_prefetch=0,
            grid=grid,
            in_specs=[
                # Row slab of x for this batch block.
                pl.BlockSpec((rows, Hp), lambda i: (i, 0)),
                # Fused weights / bias: constant index -> resident in VMEM.
                pl.BlockSpec((Hp, 3 * Hp), lambda i: (0, 0), **const_kwargs),
                pl.BlockSpec((1, 3 * Hp), lambda i: (0, 0), **const_kwargs),
            ],
            out_specs=pl.BlockSpec((rows, Hp), lambda i: (i, 0)),
        ),
        compiler_params=pltpu.CompilerParams(
            dimension_semantics=("parallel",),
            vmem_limit_bytes=48 << 20,
        ),
        cost_estimate=cost,
    )(x2, wqkv, bqkv)

    return out2[:, :H].reshape(B, S, H)


def reference(x, wq, bq, wk, bk, wv, bv):
    """Pure-JAX reference at full f32 matmul precision (matches the torch module)."""
    H = x.shape[-1]
    hp = jax.lax.Precision.HIGHEST
    q = jnp.matmul(x, wq.T, precision=hp) + bq
    k = jnp.matmul(x, wk.T, precision=hp) + bk
    v = jnp.matmul(x, wv.T, precision=hp) + bv
    scores = jnp.matmul(q, jnp.swapaxes(k, -2, -1), precision=hp) / math.sqrt(H)
    attn = jax.nn.softmax(scores, axis=-1)
    return jnp.matmul(attn, v, precision=hp)


if __name__ == "__main__":
    B, S, H = 2, 8, 32   # batch, seq, hidden
    key = jax.random.PRNGKey(0)
    kx, kq, kbq, kk, kbk, kv, kbv = jax.random.split(key, 7)

    x = jax.random.normal(kx, (B, S, H), dtype=jnp.float32)

    # Deterministic parameter init (uniform, like torch Linear default range).
    bound = 1.0 / math.sqrt(H)
    wq = jax.random.uniform(kq, (H, H), jnp.float32, -bound, bound)
    bq = jax.random.uniform(kbq, (H,), jnp.float32, -bound, bound)
    wk = jax.random.uniform(kk, (H, H), jnp.float32, -bound, bound)
    bk = jax.random.uniform(kbk, (H,), jnp.float32, -bound, bound)
    wv = jax.random.uniform(kv, (H, H), jnp.float32, -bound, bound)
    bv = jax.random.uniform(kbv, (H,), jnp.float32, -bound, bound)

    ref = reference(x, wq, bq, wk, bk, wv, bv)

    # 1) Exact-precision path: validates the kernel logic tightly.
    out_f32 = jax.block_until_ready(
        self_attention(x, wq, bq, wk, bk, wv, bv, matmul_dtype=jnp.float32))
    assert out_f32.shape == (B, S, H)
    assert jnp.allclose(out_f32, ref, atol=2e-4, rtol=2e-4), "f32 mismatch vs reference"

    # 2) Default fast path: bf16 MXU inputs, f32 accumulation / softmax stats.
    #    Tolerance sized for bf16 matmul-input rounding (~1e-3..1e-2).
    out_bf16 = jax.block_until_ready(self_attention(x, wq, bq, wk, bk, wv, bv))
    assert out_bf16.shape == (B, S, H)
    assert jnp.allclose(out_bf16, ref, atol=3e-2, rtol=3e-2), "bf16 mismatch vs reference"

    print("KERNEL_OK")
</pallas_src>

<mosaic_0001>
module attributes {stable_mosaic.version = 11 : i64} {
  func.func @kernel(%arg0: i32, %arg1: memref<8x128xf32, #tpu.memory_space<vmem>>, %arg2: memref<128x384xf32, #tpu.memory_space<vmem>>, %arg3: memref<1x384xf32, #tpu.memory_space<vmem>>, %arg4: memref<8x128xf32, #tpu.memory_space<vmem>>) attributes {dimension_semantics = [#tpu.dimension_semantics<parallel>], iteration_bounds = array<i64: 2>, scalar_prefetch = 0 : i64, scratch_operands = 0 : i64, tpu.core_type = #tpu.core_type<tc>, window_params = [{transform_indices = @transform_0, window_bounds = array<i64: 8, 128>}, {pipeline_mode = #tpu.pipeline_mode<synchronous>, transform_indices = @transform_1, window_bounds = array<i64: 128, 384>}, {pipeline_mode = #tpu.pipeline_mode<synchronous>, transform_indices = @transform_2, window_bounds = array<i64: 1, 384>}, {transform_indices = @transform_3, window_bounds = array<i64: 8, 128>}]} {
    %c0 = arith.constant 0 : index
    %c0_0 = arith.constant 0 : index
    %0 = vector.load %arg1[%c0, %c0_0] : memref<8x128xf32, #tpu.memory_space<vmem>>, vector<8x128xf32>
    %c0_1 = arith.constant 0 : index
    %c0_2 = arith.constant 0 : index
    %1 = vector.load %arg2[%c0_1, %c0_2] : memref<128x384xf32, #tpu.memory_space<vmem>>, vector<128x384xf32>
    %cst = arith.constant dense<0.000000e+00> : vector<8x384xf32>
    %2 = tpu.matmul %0, %1, %cst {dimension_numbers = #tpu.dot_dimension_numbers<[1], [0], [0], [1], [0, 0, 1, 1], [], []>, precision = #tpu.contract_precision<fp32>} : vector<8x128xf32>, vector<128x384xf32>, vector<8x384xf32> -> vector<8x384xf32>
    %c0_3 = arith.constant 0 : index
    %c0_4 = arith.constant 0 : index
    %3 = vector.load %arg3[%c0_3, %c0_4] : memref<1x384xf32, #tpu.memory_space<vmem>>, vector<1x384xf32>
    %4 = vector.broadcast %3 : vector<1x384xf32> to vector<8x384xf32>
    %5 = arith.addf %2, %4 : vector<8x384xf32>
    %6 = vector.extract_strided_slice %5 {offsets = [0, 0], sizes = [8, 128], strides = [1, 1]} : vector<8x384xf32> to vector<8x128xf32>
    %7 = vector.shape_cast %6 : vector<8x128xf32> to vector<1x8x128xf32>
    %8 = vector.extract_strided_slice %5 {offsets = [0, 128], sizes = [8, 128], strides = [1, 1]} : vector<8x384xf32> to vector<8x128xf32>
    %9 = vector.shape_cast %8 : vector<8x128xf32> to vector<1x8x128xf32>
    %10 = vector.extract_strided_slice %5 {offsets = [0, 256], sizes = [8, 128], strides = [1, 1]} : vector<8x384xf32> to vector<8x128xf32>
    %11 = vector.shape_cast %10 : vector<8x128xf32> to vector<1x8x128xf32>
    "tpu.trace_start"() <{level = 10 : i32, message = "bqd,bkd->bqk"}> : () -> ()
    %cst_5 = arith.constant dense<0.000000e+00> : vector<1x8x8xf32>
    %12 = tpu.matmul %7, %9, %cst_5 {dimension_numbers = #tpu.dot_dimension_numbers<[2], [2], [1], [1], [0, 0, 0, 1, 1, 1], [0], [0]>, precision = #tpu.contract_precision<fp32>} : vector<1x8x128xf32>, vector<1x8x128xf32>, vector<1x8x8xf32> -> vector<1x8x8xf32>
    "tpu.trace_stop"() : () -> ()
    %cst_6 = arith.constant dense<0xFF800000> : vector<1x8xf32>
    %13 = vector.multi_reduction <maximumf>, %12, %cst_6 [2] : vector<1x8x8xf32> to vector<1x8xf32>
    %14 = vector.shape_cast %13 : vector<1x8xf32> to vector<1x8x1xf32>
    %15 = vector.broadcast %14 : vector<1x8x1xf32> to vector<1x8x8xf32>
    %16 = arith.subf %12, %15 : vector<1x8x8xf32>
    %17 = math.exp %16 : vector<1x8x8xf32>
    %cst_7 = arith.constant dense<0.000000e+00> : vector<1x8xf32>
    %18 = vector.multi_reduction <add>, %17, %cst_7 [2] : vector<1x8x8xf32> to vector<1x8xf32>
    %19 = vector.shape_cast %18 : vector<1x8xf32> to vector<1x8x1xf32>
    "tpu.trace_start"() <{level = 10 : i32, message = "bqk,bkd->bqd"}> : () -> ()
    %cst_8 = arith.constant dense<0.000000e+00> : vector<1x8x128xf32>
    %20 = tpu.matmul %17, %11, %cst_8 {dimension_numbers = #tpu.dot_dimension_numbers<[2], [1], [1], [2], [0, 0, 0, 1, 1, 2], [0], [0]>, precision = #tpu.contract_precision<fp32>} : vector<1x8x8xf32>, vector<1x8x128xf32>, vector<1x8x128xf32> -> vector<1x8x128xf32>
    "tpu.trace_stop"() : () -> ()
    %21 = tpu.reciprocal %19 : vector<1x8x1xf32> -> vector<1x8x1xf32>
    %22 = vector.broadcast %21 : vector<1x8x1xf32> to vector<1x8x128xf32>
    %23 = arith.mulf %20, %22 : vector<1x8x128xf32>
    %24 = vector.shape_cast %23 : vector<1x8x128xf32> to vector<8x128xf32>
    %c0_9 = arith.constant 0 : index
    %c0_10 = arith.constant 0 : index
    %25 = vector.load %arg4[%c0_9, %c0_10] : memref<8x128xf32, #tpu.memory_space<vmem>>, vector<8x128xf32>
    tpu.vector_store %arg4[%c0_9, %c0_10], %24 {strides = array<i32>} : memref<8x128xf32, #tpu.memory_space<vmem>>, vector<8x128xf32>,
    return
  }
  func.func @transform_0(%arg0: i32) -> (i32, i32) {
    %c0_i32 = arith.constant 0 : i32
    %c0_i32_0 = arith.constant 0 : i32
    return %arg0, %c0_i32 : i32, i32
  }
  func.func @transform_1(%arg0: i32) -> (i32, i32) {
    %c0_i32 = arith.constant 0 : i32
    %c0_i32_0 = arith.constant 0 : i32
    %c0_i32_1 = arith.constant 0 : i32
    return %c0_i32, %c0_i32_0 : i32, i32
  }
  func.func @transform_2(%arg0: i32) -> (i32, i32) {
    %c0_i32 = arith.constant 0 : i32
    %c0_i32_0 = arith.constant 0 : i32
    %c0_i32_1 = arith.constant 0 : i32
    return %c0_i32, %c0_i32_0 : i32, i32
  }
  func.func @transform_3(%arg0: i32) -> (i32, i32) {
    %c0_i32 = arith.constant 0 : i32
    %c0_i32_0 = arith.constant 0 : i32
    return %arg0, %c0_i32 : i32, i32
  }
}

</mosaic_0001>

<bundles_post_ra>
// kernel: tpu_custom_call.1
= control target key start
LH: loop header
LB: loop body
LE: loop exit
PB: predicated region body
PF: predicated region fallthrough
CT: control target
= control target key end

     0   :  { %8 = vsyncpa [#allocation3], 0  ;;  %s4738_s0 = inlined_call_operand.hbm [shape: f32[16,128], index: 0, kind: input, shape index: {}]   ;;  %s4739_s1 = inlined_call_operand.hbm [shape: f32[128,384], index: 1, kind: input, shape index: {}]   ;;  %s4740_s2 = inlined_call_operand.vmem [shape: f32[1,384], index: 2, kind: input, shape index: {}]   ;;  %s4741_s3 = inlined_call_operand.hbm [shape: f32[16,128], index: 3, kind: output, shape index: {}]  }
   0x1   :  { %10 = vsyncpa [#allocation3 + $0x1], 0 }
   0x2   :  { %11 = vsyncpa [#allocation6], 0 }
   0x3   :  { %12 = vsyncpa [#allocation4], 0 }
   0x4   :  { %14 = vsyncpa [#allocation4 + $0x1], 0  ;;  %s3778_s12 = smov 0   ;;  %s3780_s13 = smov 0  }
   0x5   :  { %s3782_s14 = smov 0   ;;  %s3784_s15 = smov 0  }
   0x6 LB: > { %s3799_s16 = sadd.s32 4294967295, %s3748_s15   ;;  %s2765_s17 = sadd.s32 4294967294, %s3748_s15   ;;  %s3748_s15 = sphi %s3784_s15, %s4963_s15   ;;  %s3744_s14 = sphi %s3782_s14, %s4962_s14   ;;  %s3740_s13 = sphi %s3780_s13, %s4961_s13   ;;  %s3736_s12 = sphi %s3778_s12, %s4960_s12  }
   0x7   : > { %p40_p0 = scmp.ne.s32.totalorder %s3740_s13, %s3736_s12  ;;  %p4742_p1 = scmp.eq.s32.totalorder %s3799_s16, 0 }
   0x8   : > { %p112_p3 = scmp.eq.s32.totalorder %s2765_s17, 1  ;;  %p2766_p5 = scmp.ge.s32.totalorder %s3748_s15, 1 }
   0x9   : > { %p3808_p4 = por %p4742_p1, %p40_p0  ;;  %p119_p7 = scmp.lt.s32.totalorder %s3748_s15, 3 }
   0xa   : > { %p3813_p6 = por %p112_p3, %p40_p0  ;;  %s3750_s21 = smov [#allocation5]  }
   0xb   : > { %s4828_s18 = scalar_select %p3808_p4, 1, 0 }
   0xc   : > { %s4829_s19 = scalar_select %p3813_p6, 1, 0 }
   0xd   : > { %p3818_p8 = pnand %p2766_p5, %p119_p7  ;;  %s131_s22 = sshll.u32 %s3750_s21, 4  ;;  %s3822_s22 = int_to_ptr.vmem [resolvable:$true] %s131_s22 }
   0xe   : > { %s3834_s24 = sadd.s32 1, %s3748_s15   ;;  %s27_s25 = sadd.s32 1, %s3744_s14 }
   0xf   : > { %s4830_s20 = scalar_select %p3818_p8, 1, 0 }
  0x10   : > { %p3562_p9 = pneg %p3818_p8  ;;  %s24_s26 = ssub.s32 %s3748_s15, %s3834_s24 }
  0x11   : > { %s3620_s29 = scalar_lea.hbm %s4739_s1, 6144 }
  0x12   : > { %p3829_p11 = pnand %p3562_p9, %p4742_p1  ;;  %p3621_p12 = scmp.ne.s32.totalorder %s4739_s1, %s3620_s29 }
  0x13   : > { %p3627_p5 = scmp.lt.u32.totalorder %s3620_s29, %s4739_s1 }
  0x14   : > { %p3622_p13 = pneg %p3829_p11 }
  0x16   : > { %p3623_p0 = pnand %p3622_p13, %p3621_p12 }
  0x18   : > { %p3624_p3 = pneg %p3623_p0 }
  0x1a   : > { %p3629_p7 = pnand %p3627_p5, %p3624_p3 }
  0x1c   : > { %3632 = shalt.err (!%p3629_p7)
}
  0x1d   : > { %s3633_s7 = scalar_lea.vmem %s3822_s22, 6144  ;;  %p3641_p2 = scmp.lt.s32.totalorder %s3822_s22, %s3822_s22 }
  0x1e   : > { %p3634_p9 = scmp.ne.s32.totalorder %s3822_s22, %s3633_s7  ;;  %p3642_p6 = scmp.lt.s32.totalorder %s3633_s7, %s3633_s7 }
  0x20   : > { %p3636_p10 = pnand %p3634_p9, %p3622_p13  ;;  %p3643_p4 = por %p3642_p6, %p3641_p2 }
  0x22   : > { %p3637_p1 = pneg %p3636_p10 }
  0x24   : > { %p3644_p8 = pnand %p3643_p4, %p3637_p1 }
  0x26   : > { %3647 = shalt.err (!%p3644_p8)
}
  0x27   : > { %s3751_s8 = smov 384   ;;  %s3752_s9 = smov 24  }
  0x28   : > { %3565 = dma.hbm_to_vmem [thread:$0]  (!%p3829_p11), %s4739_s1, 6144, %s3822_s22, [#allocation6], %s3751_s8, %s3751_s8, %s3752_s9  }
  0x29   : > { %p25_p2 = scmp.eq.s32.totalorder %s24_s26, 0  ;;  %p34_p1 = scmp.ne.s32.totalorder %s3744_s14, %s3740_s13 }
  0x2a   : > { %p35_p4 = scmp.eq.s32.totalorder %s3748_s15, 0  ;;  %p3575_p6 = scmp.lt.s32.totalorder %s3748_s15, 2 }
  0x2b   : > { %s3865_s17 = scalar_select %p25_p2, %s3744_s14, %s27_s25  }
  0x2c   : > { %p36_p8 = por %p35_p4, %p34_p1  ;;  %p4832_p10 = scmp.eq.s32.totalorder %s3799_s16, 1 }
  0x2d   : > { %s148_s27 = sand.u32 1, %s3744_s14   ;;  %s2770_s28 = sshll.u32 %s3748_s15, 7 }
  0x2e   : > { %p3869_p12 = por %p4832_p10, %p34_p1  ;;  %s2769_s29 = sshll.u32 %s148_s27, 3 }
  0x2f   : > { %s3878_s4 = scalar_lea.hbm %s4738_s0, %s2770_s28  ;;  %s152_s22 = scalar_lea.vmem [#allocation2], %s2769_s29 }
  0x30   : > { %s159_s25 = sshll.u32 %s152_s22, 4  ;;  %p3880_p11 = pnand %p3575_p6, %p36_p8  ;;  %s3884_s25 = int_to_ptr.vmem [resolvable:$true] %s159_s25 }
  0x31   : > { %s149_s5 = scalar_lea.sflag [#allocation3], %s148_s27  ;;  %s3648_s6 = scalar_lea.hbm %s3878_s4, 128 }
  0x32   : > { %p3649_p13 = scmp.ne.s32.totalorder %s3878_s4, %s3648_s6  ;;  %p3650_p0 = pneg %p3880_p11 }
  0x33   : > { %s3653_s9 = scalar_lea.hbm %s4738_s0, 256  ;;  %p3654_p7 = scmp.lt.u32.totalorder %s3878_s4, %s4738_s0 }
  0x34   : > { %p3651_p3 = pnand %p3650_p0, %p3649_p13  ;;  %p3655_p9 = scmp.lt.u32.totalorder %s3653_s9, %s3648_s6 }
  0x35   : > { %p3657_p1 = scmp.lt.u32.totalorder %s3648_s6, %s3878_s4 }
  0x36   : > { %p3652_p5 = pneg %p3651_p3  ;;  %p3656_p2 = por %p3655_p9, %p3654_p7 }
  0x38   : > { %p3658_p4 = por %p3657_p1, %p3656_p2 }
  0x3a   : > { %p3659_p6 = pnand %p3658_p4, %p3652_p5 }
  0x3c   : > { %3662 = shalt.err (!%p3659_p6)
}
  0x3d   : > { %s3663_s27 = scalar_lea.vmem %s3884_s25, 128  ;;  %s3753_s28 = smov [#allocation2]  }
  0x3e   : > { %p3664_p8 = scmp.ne.s32.totalorder %s3884_s25, %s3663_s27  ;;  %s3668_s29 = sshll.u32 %s3753_s28, 4  ;;  %s3669_s29 = int_to_ptr.vmem [resolvable:$false] %s3668_s29 }
  0x3f   : > { %s3670_s23 = scalar_lea.vmem %s3669_s29, 256  ;;  %p3671_p3 = scmp.lt.s32.totalorder %s3884_s25, %s3669_s29 }
  0x40   : > { %p3666_p10 = pnand %p3664_p8, %p3650_p0  ;;  %p3672_p7 = scmp.lt.s32.totalorder %s3670_s23, %s3663_s27 }
  0x42   : > { %p3667_p13 = pneg %p3666_p10  ;;  %p3673_p9 = por %p3672_p7, %p3671_p3 }
  0x44   : > { %p3674_p2 = pnand %p3673_p9, %p3667_p13 }
  0x46   : > { %3677 = shalt.err (!%p3674_p2)
}
  0x47   : > { %3569 = dma.hbm_to_vmem [thread:$0]  (!%p3880_p11), %s3878_s4, 128, %s3884_s25, %s149_s5  }
  0x48   : > { %p4835_p5 = scmp.ne.s32.totalorder %s4830_s20, 0 }
  0x4a   : > { %168 = sbr.rel (%p4835_p5) target bundleno = 1198 (0x4ae), region = 32 }
  0x51   : > { %s3914_s30 = sand.u32 1, %s3740_s13   ;;  %p4836_p0 = scmp.ne.s32.totalorder %s4828_s18, 0 }
  0x52   : > { %s2772_s22 = sshll.u32 %s3914_s30, 3  ;;  %s171_s6 = scalar_lea.sflag [#allocation3], %s3914_s30 }
  0x53   : > { %s3920_s7 = scalar_lea.vmem [#allocation2], %s2772_s22 }
  0x54   : > { %3723 = dma.done.wait (%p4836_p0), %s171_s6, 128  }
  0x55   : > { %3725 = vsyncadd (%p4836_p0), %s171_s6, 4294967168  ;;  %p4837_p11 = scmp.eq.s32.totalorder %s3799_s16, 0 }
  0x57   : > { %3727 = dma.done.wait (%p4837_p11), [#allocation6], 6144   ;;  %p4838_p1 = pmov %p4837_p11 }
  0x58   : > { %v4747_v0 = vmov 0.0   ;;  %v203_v1 = vld [vmem:[#allocation5 + $0x8] sm:$0xff]  ;;  %v206_v2 = vld [vmem:[#allocation5 + $0x20] sm:$0xff]  ;;  %v205_v6 = vld [vmem:[#allocation5 + $0x18] sm:$0xff]  ;;  %vm3756_vm0 = vmmov 0   ;;  %vm2209_vm1 = vcmask 64512  }
  0x59   : > { %3729 = vsyncadd (%p4838_p1), [#allocation6], 4294961152  ;;  %363 = vmatprep.mubr.f32.mxu0 %v4747_v0  ;;  %v202_v3 = vld [vmem:[#allocation5] sm:$0xff]  ;;  %v267_v4 = vand.u32 4294901760, %v203_v1  ;;  %v271_v5 = vand.u32 4294901760, %v206_v2  ;;  %v209_v8 = vld [vmem:[#allocation5 + $0x38] sm:$0xff] }
  0x5a   : > { %v269_v7 = vand.u32 4294901760, %v202_v3  ;;  %v212_v9 = vld [vmem:[#allocation5 + $0x50] sm:$0xff]  ;;  %v273_v10 = vand.u32 4294901760, %v205_v6  ;;  %v275_v11 = vand.u32 4294901760, %v209_v8  ;;  %v211_v14 = vld [vmem:[#allocation5 + $0x48] sm:$0xff]  ;;  %v218_v17 = vld [vmem:[#allocation5 + $0x80] sm:$0xff] }
  0x5b   : > { %v279_v12 = vand.u32 4294901760, %v212_v9  ;;  %v208_v13 = vld [vmem:[#allocation5 + $0x30] sm:$0xff]  ;;  %v215_v15 = vld [vmem:[#allocation5 + $0x68] sm:$0xff]  ;;  %v3931_v16 = vpack.c.bf16 %v271_v5, %v267_v4  ;;  %v214_v18 = vld [vmem:[#allocation5 + $0x60] sm:$0xff]  ;;  %v281_v24 = vand.u32 4294901760, %v211_v14  ;;  %v287_v26 = vand.u32 4294901760, %v218_v17 }
  0x5c   : > { %v217_v19 = vld [vmem:[#allocation5 + $0x78] sm:$0xff]  ;;  %v3933_v20 = vpack.c.bf16 %v273_v10, %v269_v7  ;;  %v277_v23 = vand.u32 4294901760, %v208_v13  ;;  %v283_v25 = vand.u32 4294901760, %v215_v15  ;;  %v285_v27 = vand.u32 4294901760, %v214_v18  ;;  %v224_v29 = vld [vmem:[#allocation5 + $0xb0] sm:$0xff]  ;;  %v223_v33 = vld [vmem:[#allocation5 + $0xa8] sm:$0xff] }
  0x5d   : > { %4839 = vst [vmem:[#allocation11_spill] sm:$0xff] %v3931_v16  ;;  %v3935_v21 = vpack.c.bf16 %v279_v12, %v275_v11  ;;  %v221_v22 = vld [vmem:[#allocation5 + $0x98] sm:$0xff]  ;;  %3176 = vmatprep.subr.bf16.mxu0 %v3931_v16  ;;  %v289_v28 = vand.u32 4294901760, %v217_v19  ;;  %v220_v30 = vld [vmem:[#allocation5 + $0x90] sm:$0xff]  ;;  %v227_v34 = vld [vmem:[#allocation5 + $0xc8] sm:$0xff]  ;;  %v3942_v36 = vsub.f32 %v203_v1, %v267_v4  ;;  %v3944_v37 = vsub.f32 %v206_v2, %v271_v5  ;;  %s2776_s4 = sshll.u32 %s3799_s16, 7 }
  0x5e   : > { %4840 = vst [vmem:[#allocation12_spill] sm:$0xff] %v3933_v20  ;;  %3178 = vmatpush1.bf16.msra.mxu0 %v3933_v20  ;;  %v3940_v31 = vpack.c.bf16 %v281_v24, %v277_v23  ;;  %v291_v32 = vand.u32 4294901760, %v221_v22  ;;  %v230_v35 = vld [vmem:[#allocation5 + $0xe0] sm:$0xff]  ;;  %v3946_v38 = vsub.f32 %v202_v3, %v269_v7  ;;  %v3948_v39 = vpack.c.bf16 %v287_v26, %v283_v25  ;;  %v229_v49 = vld [vmem:[#allocation5 + $0xd8] sm:$0xff]  ;;  %v236_v55 = vld [vmem:[#allocation5 + $0x110] sm:$0xff]  ;;  %s200_s25 = scalar_lea.vmem [#allocation7], %s2772_s22  ;;  %s4694_s9 = scalar_lea.hbm %s4741_s3, %s2776_s4 }
  0x5f   : > { %4841 = vst [vmem:[#allocation13_spill] sm:$0xff] %v3935_v21  ;;  %3180 = vmatprep.subr.bf16.mxu0 %v3935_v21  ;;  %v3950_v40 = vsub.f32 %v205_v6, %v273_v10  ;;  %v3952_v41 = vsub.f32 %v209_v8, %v275_v11  ;;  %v3954_v42 = vpack.c.bf16 %v289_v28, %v285_v27  ;;  %v295_v43 = vand.u32 4294901760, %v224_v29  ;;  %v226_v48 = vld [vmem:[#allocation5 + $0xc0] sm:$0xff]  ;;  %v233_v54 = vld [vmem:[#allocation5 + $0xf8] sm:$0xff]  ;;  %v232_v56 = vld [vmem:[#allocation5 + $0xf0] sm:$0xff]  ;;  %s2685_s26 = sshll.u32 %s200_s25, 4  ;;  %s4696_s26 = int_to_ptr.vmem [resolvable:$true] %s2685_s26 }
  0x60   : > { %4842 = vst [vmem:[#allocation14_spill] sm:$0xff] %v3940_v31  ;;  %4843 = vst [vmem:[#allocation15_spill] sm:$0xff] %v3948_v39  ;;  %v293_v44 = vand.u32 4294901760, %v220_v30  ;;  %v297_v45 = vand.u32 4294901760, %v223_v33  ;;  %v299_v46 = vand.u32 4294901760, %v227_v34  ;;  %v303_v47 = vand.u32 4294901760, %v230_v35 }
  0x61   : > { %4844 = vst [vmem:[#allocation16_spill] sm:$0xff] %v3954_v42  ;;  %v3957_v50 = vsub.f32 %v212_v9, %v279_v12  ;;  %v3959_v51 = vsub.f32 %v208_v13, %v277_v23  ;;  %v3961_v52 = vsub.f32 %v211_v14, %v281_v24  ;;  %v3964_v53 = vpack.c.bf16 %v295_v43, %v291_v32  ;;  %v235_v61 = vld [vmem:[#allocation5 + $0x108] sm:$0xff]  ;;  %v242_v63 = vld [vmem:[#allocation5 + $0x140] sm:$0xff]  ;;  %v241_v10 = vld [vmem:[#allocation5 + $0x138] sm:$0xff]  ;;  %s2672_s10 = scalar_lea.sflag [#allocation4], %s3914_s30  ;;  %s3678_s16 = scalar_lea.vmem %s4696_s26, 128 }
  0x62   : > { %3182 = vmatpush1.bf16.msra.mxu0 %v3940_v31  ;;  %v3966_v57 = vsub.f32 %v215_v15, %v283_v25  ;;  %v3968_v58 = vsub.f32 %v218_v17, %v287_v26  ;;  %v3970_v59 = vsub.f32 %v214_v18, %v285_v27  ;;  %v3972_v60 = vsub.f32 %v217_v19, %v289_v28  ;;  %v239_v62 = vld [vmem:[#allocation5 + $0x128] sm:$0xff]  ;;  %v238_v9 = vld [vmem:[#allocation5 + $0x120] sm:$0xff]  ;;  %v201_v26 = vld [vmem:[%s3920_s7] sm:$0xff]  ;;  %p3679_p4 = scmp.ne.s32.totalorder %s4696_s26, %s3678_s16  ;;  %s3757_s11 = smov [#allocation7]  }
  0x63   : > { %3184 = vmatprep.subr.bf16.mxu0 %v3948_v39  ;;  %4845 = vst [vmem:[#allocation17_spill] sm:$0xff] %v3964_v53  ;;  %v3974_v1 = vsub.f32 %v221_v22, %v291_v32  ;;  %v3976_v2 = vsub.f32 %v224_v29, %v295_v43  ;;  %v301_v3 = vand.u32 4294901760, %v226_v48  ;;  %v305_v4 = vand.u32 4294901760, %v229_v49  ;;  %v245_v43 = vld [vmem:[#allocation5 + $0x158] sm:$0xff]  ;;  %s3682_s27 = sshll.u32 %s3757_s11, 4  ;;  %s3683_s27 = int_to_ptr.vmem [resolvable:$false] %s3682_s27 }
  0x64   : > { %v3979_v5 = vpack.c.bf16 %v297_v45, %v293_v44  ;;  %v3981_v6 = vpack.c.bf16 %v303_v47, %v299_v46  ;;  %v307_v7 = vand.u32 4294901760, %v233_v54  ;;  %v311_v8 = vand.u32 4294901760, %v236_v55  ;;  %p3680_p6 = pnand %p3679_p4, %p3869_p12  ;;  %s3684_s28 = scalar_lea.vmem %s3683_s27, 256 }
  0x65   : > { %v309_v11 = vand.u32 4294901760, %v232_v56  ;;  %v313_v12 = vand.u32 4294901760, %v235_v61  ;;  %v315_v13 = vand.u32 4294901760, %v239_v62  ;;  %v319_v14 = vand.u32 4294901760, %v242_v63  ;;  %p3685_p10 = scmp.lt.s32.totalorder %s4696_s26, %s3683_s27  ;;  %p3686_p13 = scmp.lt.s32.totalorder %s3684_s28, %s3678_s16 }
  0x66   : > { %3186 = vmatpush1.bf16.msra.mxu0 %v3954_v42  ;;  %4846 = vst [vmem:[#allocation18_spill] sm:$0xff] %v3979_v5  ;;  %4847 = vst [vmem:[#allocation19_spill] sm:$0xff] %v3981_v6  ;;  %v3984_v15 = vsub.f32 %v220_v30, %v293_v44  ;;  %v3986_v17 = vsub.f32 %v223_v33, %v297_v45  ;;  %v3988_v18 = vsub.f32 %v227_v34, %v299_v46  ;;  %v248_v45 = vld [vmem:[#allocation5 + $0x170] sm:$0xff]  ;;  %p3681_p8 = pneg %p3680_p6 }
  0x67   : > { %3188 = vmatprep.subr.bf16.mxu0 %v3964_v53  ;;  %v3990_v19 = vsub.f32 %v230_v35, %v303_v47  ;;  %v3992_v22 = vpack.c.bf16 %v305_v4, %v301_v3  ;;  %v3994_v23 = vsub.f32 %v226_v48, %v301_v3  ;;  %v317_v24 = vand.u32 4294901760, %v238_v9  ;;  %p3687_p3 = por %p3686_p13, %p3685_p10 }
  0x68   : > { %v321_v25 = vand.u32 4294901760, %v241_v10  ;;  %v3998_v27 = vsub.f32 %v229_v49, %v305_v4  ;;  %v4000_v28 = vpack.c.bf16 %v311_v8, %v307_v7  ;;  %v4002_v29 = vsub.f32 %v233_v54, %v307_v7 }
  0x69   : > { %4848 = vst [vmem:[#allocation20_spill] sm:$0xff] %v3992_v22  ;;  %v4004_v30 = vsub.f32 %v236_v55, %v311_v8  ;;  %v4007_v32 = vpack.c.bf16 %v313_v12, %v309_v11  ;;  %v4009_v33 = vsub.f32 %v232_v56, %v309_v11  ;;  %v4011_v34 = vsub.f32 %v235_v61, %v313_v12  ;;  %v244_v56 = vld [vmem:[#allocation5 + $0x150] sm:$0xff]  ;;  %v4027_v61 = vld [vmem:[#allocation5 + $0x168] sm:$0xff]  ;;  %p3688_p7 = pnand %p3687_p3, %p3681_p8 }
  0x6a   : > { %3190 = vmatpush1.bf16.msra.mxu0 %v3979_v5  ;;  %4849 = vst [vmem:[#allocation21_spill] sm:$0xff] %v4000_v28  ;;  %v4013_v35 = vpack.c.bf16 %v319_v14, %v315_v13  ;;  %v4015_v44 = vsub.f32 %v239_v62, %v315_v13  ;;  %v4745_v46 = vand.u32 4294901760, %v3942_v36  ;;  %v4746_v47 = vand.u32 4294901760, %v3944_v37 }
  0x6b   : > { %3192 = vmatprep.subr.bf16.mxu0 %v3981_v6  ;;  %4850 = vst [vmem:[#allocation22_spill] sm:$0xff] %v4007_v32  ;;  %v4019_v48 = vand.u32 4294901760, %v201_v26  ;;  %v4021_v49 = vsub.f32 %v242_v63, %v319_v14  ;;  %v4023_v54 = vpack.c.bf16 %v321_v25, %v317_v24  ;;  %v4025_v55 = vsub.f32 %v238_v9, %v317_v24 }
  0x6c   : > { %4851 = vst [vmem:[#allocation23_spill] sm:$0xff] %v4013_v35  ;;  %v4749_v3 = vand.u32 4294901760, %v3946_v38  ;;  %v4031_v62 = vsub.f32 %v241_v10, %v321_v25  ;;  %v323_v4 = vand.u32 4294901760, %v245_v43  ;;  %v378_v7 = vsub.f32 %v3942_v36, %v4745_v46 }
  0x6d   : > { %4852 = vst [vmem:[#allocation24_spill] sm:$0xff] %v4021_v49  ;;  %4853 = vst [vmem:[#allocation25_spill] sm:$0xff] %v4023_v54  ;;  %v390_v63 = vsub.f32 %v3944_v37, %v4746_v47  ;;  %v327_v8 = vand.u32 4294901760, %v248_v45  ;;  %v4041_v9 = vsub.f32 %v201_v26, %v4019_v48  ;;  %v4752_v11 = vand.u32 4294901760, %v3950_v40 }
  0x6e   : > { %4854 = vst [vmem:[#allocation26_spill] sm:$0xff] %v4025_v55  ;;  %3194 = vmatpush1.bf16.msra.mxu0 %v3992_v22  ;;  %4855 = vst [vmem:[#allocation27_spill] sm:$0xff] %v4031_v62  ;;  %v4757_v10 = vand.u32 4294901760, %v3952_v41  ;;  %v325_v12 = vand.u32 4294901760, %v244_v56  ;;  %v4758_v14 = vand.u32 4294901760, %v3957_v50  ;;  %v379_v25 = vand.u32 4294901760, %v378_v7 }
  0x6f   : > { %3196 = vmatprep.subr.bf16.mxu0 %v4000_v28  ;;  %4856 = vst [vmem:[#allocation28_spill] sm:$0xff] %v4041_v9  ;;  %v391_v46 = vand.u32 4294901760, %v390_v63  ;;  %v4049_v47 = vand.u32 4294901760, %v4041_v9  ;;  %v384_v26 = vsub.f32 %v3946_v38, %v4749_v3  ;;  %v396_v0 = vsub.f32 %v3950_v40, %v4752_v11 }
  0x70   : > { %v402_v13 = vsub.f32 %v3952_v41, %v4757_v10  ;;  %v414_v7 = vsub.f32 %v3957_v50, %v4758_v14  ;;  %v4765_v63 = vand.u32 4294901760, %v3961_v52  ;;  %v4066_v24 = vpack.c.bf16 %v327_v8, %v323_v4 }
  0x71   : > { %4857 = vst [vmem:[#allocation29_spill] sm:$0xff] %v4049_v47  ;;  %v4068_v3 = vsub.f32 %v245_v43, %v323_v4  ;;  %v4859_v28 = vand.u32 4294901760, %v4027_v61  ;;  %v4861_v10 = vand.u32 4294901760, %v3959_v51  ;;  %v3207_v43 = vpack.c.bf16 %v391_v46, %v379_v25 }
  0x72   : > { %3198 = vmatpush1.bf16.msra.mxu0 %v4007_v32  ;;  %4858 = vst [vmem:[#allocation30_spill] sm:$0xff] %v4066_v24  ;;  %v4070_v32 = vsub.f32 %v248_v45, %v327_v8  ;;  %v367_v45 = vsub.f32 %v4041_v9, %v4049_v47  ;;  %v385_v4 = vand.u32 4294901760, %v384_v26  ;;  %v403_v11 = vand.u32 4294901760, %v402_v13 }
  0x73   : > { %3200 = vmatprep.subr.bf16.mxu0 %v4013_v35  ;;  %v4075_v22 = vpack.c.bf16 %v4859_v28, %v325_v12  ;;  %v408_v14 = vsub.f32 %v3959_v51, %v4861_v10  ;;  %v420_v35 = vsub.f32 %v3961_v52, %v4765_v63  ;;  %v397_v28 = vand.u32 4294901760, %v396_v0 }
  0x74   : > { %v415_v5 = vand.u32 4294901760, %v414_v7  ;;  %v4774_v10 = vand.u32 4294901760, %v3972_v60  ;;  %v4862_v63 = vand.u32 4294901760, %v3966_v57  ;;  %v4863_v46 = vand.u32 4294901760, %v3968_v58 }
  0x75   : > { %4860 = vst [vmem:[#allocation31_spill] sm:$0xff] %v4075_v22  ;;  %v4779_v26 = vand.u32 4294901760, %v3974_v1  ;;  %v4784_v8 = vand.u32 4294901760, %v3976_v2  ;;  %v409_v47 = vand.u32 4294901760, %v408_v14  ;;  %v421_v0 = vand.u32 4294901760, %v420_v35 }
  0x76   : > { %3202 = vmatpush1.bf16.msra.mxu0 %v4023_v54  ;;  %v426_v6 = vsub.f32 %v3966_v57, %v4862_v63  ;;  %v438_v25 = vsub.f32 %v3968_v58, %v4863_v46  ;;  %v4864_v13 = vand.u32 4294901760, %v3970_v59  ;;  %v4104_v54 = vand.u32 4294901760, %v367_v45 }
  0x77   : > { %3204 = vmatprep.subr.bf16.mxu0 %v4066_v24  ;;  %v444_v24 = vsub.f32 %v3972_v60, %v4774_v10  ;;  %v450_v63 = vsub.f32 %v3974_v1, %v4779_v26  ;;  %v462_v46 = vsub.f32 %v3976_v2, %v4784_v8  ;;  %v4114_v14 = vsub.f32 %v244_v56, %v325_v12 }
  0x78   : > { %v432_v7 = vsub.f32 %v3970_v59, %v4864_v13  ;;  %4865 = vst [vmem:[#allocation32_spill] sm:$0xff] %v4104_v54  ;;  %v3209_v13 = vpack.c.bf16 %v397_v28, %v385_v4  ;;  %v4788_v53 = vand.u32 4294901760, %v3986_v17  ;;  %v4787_v45 = vand.u32 4294901760, %v3988_v18 }
  0x79   : > { %v3211_v10 = vpack.c.bf16 %v415_v5, %v403_v11  ;;  %v427_v42 = vand.u32 4294901760, %v426_v6  ;;  %v439_v39 = vand.u32 4294901760, %v438_v25  ;;  %v4786_v26 = vand.u32 4294901760, %v3990_v19 }
  0x7a   : > { %3206 = vmatpush1.bf16.msra.mxu0 %v4075_v22  ;;  %v3213_v31 = vpack.c.bf16 %v421_v0, %v409_v47  ;;  %v433_v21 = vand.u32 4294901760, %v432_v7  ;;  %v445_v8 = vand.u32 4294901760, %v444_v24  ;;  %v4785_v35 = vand.u32 4294901760, %v3994_v23 }
  0x7b   : > { %3208 = vmatprep.subr.bf16.mxu0 %v3207_v43  ;;  %v451_v56 = vand.u32 4294901760, %v450_v63  ;;  %v463_v12 = vand.u32 4294901760, %v462_v46  ;;  %v4866_v4 = vand.u32 4294901760, %v3984_v15  ;;  %v4789_v43 = vand.u32 4294901760, %v3998_v27 }
  0x7c   : > { %v468_v5 = vsub.f32 %v3986_v17, %v4788_v53  ;;  %v474_v6 = vsub.f32 %v3988_v18, %v4787_v45  ;;  %v486_v47 = vsub.f32 %v3990_v19, %v4786_v26  ;;  %v4867_v11 = vmov 0.0  }
  0x7d   : > { %369 = vmatmul.mubr.f32.vlgmr.msra.gmra.mrb[0].mxu0 %v4104_v54  ;;  %v456_v28 = vsub.f32 %v3984_v15, %v4866_v4  ;;  %v3215_v24 = vpack.c.bf16 %v439_v39, %v427_v42  ;;  %v480_v25 = vsub.f32 %v3994_v23, %v4785_v35  ;;  %v4791_v0 = vand.u32 4294901760, %v4002_v29 }
  0x7e   : > { %3210 = vmatpush1.bf16.msra.mxu0 %v3209_v13  ;;  %599 = vmatprep.mubr.f32.mxu0 %v4867_v11  ;;  %v4868_v63 = vand.u32 4294901760, %v4027_v61  ;;  %v492_v13 = vsub.f32 %v3998_v27, %v4789_v43  ;;  %v4790_v39 = vand.u32 4294901760, %v4011_v34  ;;  %v3217_v42 = vpack.c.bf16 %v445_v8, %v433_v21 }
  0x7f   : > { %3212 = vmatprep.subr.bf16.mxu0 %v3211_v10  ;;  %v3219_v4 = vpack.c.bf16 %v463_v12, %v451_v56  ;;  %v457_v35 = vand.u32 4294901760, %v456_v28  ;;  %v4797_v26 = vand.u32 4294901760, %v4015_v44  ;;  %v469_v45 = vand.u32 4294901760, %v468_v5 }
  0x80   : > { %v4143_v46 = vsub.f32 %v4027_v61, %v4868_v63  ;;  %v475_v53 = vand.u32 4294901760, %v474_v6  ;;  %v487_v7 = vand.u32 4294901760, %v486_v47  ;;  %v533_v61 = vand.u32 4294901760, %v4021_v49 }
  0x81   : > { %v481_v63 = vand.u32 4294901760, %v480_v25  ;;  %v498_v43 = vsub.f32 %v4002_v29, %v4791_v0  ;;  %v4869_v10 = vand.u32 4294901760, %v4004_v30  ;;  %v527_v8 = vand.u32 4294901760, %v4025_v55 }
  0x82   : > { %3214 = vmatpush1.bf16.msra.mxu0 %v3213_v31  ;;  %v493_v56 = vand.u32 4294901760, %v492_v13  ;;  %v4870_v31 = vand.u32 4294901760, %v4009_v33  ;;  %v516_v28 = vsub.f32 %v4011_v34, %v4790_v39  ;;  %v539_v5 = vand.u32 4294901760, %v4031_v62 }
  0x83   : > { %3216 = vmatprep.subr.bf16.mxu0 %v3215_v24  ;;  %v510_v21 = vsub.f32 %v4004_v30, %v4869_v10  ;;  %v522_v6 = vsub.f32 %v4015_v44, %v4797_v26  ;;  %v534_v47 = vsub.f32 %v4021_v49, %v533_v61  ;;  %v545_v24 = vand.u32 4294901760, %v4068_v3 }
  0x84   : > { %v504_v12 = vsub.f32 %v4009_v33, %v4870_v31  ;;  %v557_v25 = vand.u32 4294901760, %v4070_v32  ;;  %v3221_v13 = vpack.c.bf16 %v469_v45, %v457_v35  ;;  %v528_v10 = vsub.f32 %v4025_v55, %v527_v8 }
  0x85   : > { %v540_v31 = vsub.f32 %v4031_v62, %v539_v5  ;;  %v551_v39 = vand.u32 4294901760, %v4114_v14  ;;  %v3223_v0 = vpack.c.bf16 %v487_v7, %v475_v53  ;;  %v499_v22 = vand.u32 4294901760, %v498_v43 }
  0x86   : > { %3218 = vmatpush1.bf16.msra.mxu0 %v3217_v42  ;;  %v511_v54 = vand.u32 4294901760, %v510_v21  ;;  %v3225_v20 = vpack.c.bf16 %v493_v56, %v481_v63  ;;  %v505_v26 = vand.u32 4294901760, %v504_v12  ;;  %v517_v9 = vand.u32 4294901760, %v516_v28 }
  0x87   : > { %3220 = vmatprep.subr.bf16.mxu0 %v3219_v4  ;;  %v523_v16 = vand.u32 4294901760, %v522_v6  ;;  %v535_v49 = vand.u32 4294901760, %v534_v47  ;;  %v546_v11 = vsub.f32 %v4068_v3, %v545_v24  ;;  %v558_v42 = vsub.f32 %v4070_v32, %v557_v25 }
  0x88   : > { %v529_v35 = vand.u32 4294901760, %v528_v10  ;;  %v541_v45 = vand.u32 4294901760, %v540_v31  ;;  %v552_v62 = vsub.f32 %v4114_v14, %v551_v39  ;;  %v563_v55 = vand.u32 4294901760, %v4143_v46 }
  0x89   : > { %v3227_v53 = vpack.c.bf16 %v511_v54, %v499_v22  ;;  %v3229_v43 = vpack.c.bf16 %v517_v9, %v505_v26  ;;  %v3231_v7 = vpack.c.bf16 %v535_v49, %v523_v16  ;;  %v547_v4 = vand.u32 4294901760, %v546_v11 }
  0x8a   : > { %3222 = vmatpush1.bf16.msra.mxu0 %v3221_v13  ;;  %v559_v63 = vand.u32 4294901760, %v558_v42  ;;  %v3233_v21 = vpack.c.bf16 %v541_v45, %v529_v35  ;;  %v553_v56 = vand.u32 4294901760, %v552_v62  ;;  %v564_v12 = vsub.f32 %v4143_v46, %v563_v55 }
  0x8b   : > { %3224 = vmatprep.subr.bf16.mxu0 %v3223_v0  ;;  %v4871_v28 = vand.u32 4294901760, %v3942_v36  ;;  %v4872_v6 = vand.u32 4294901760, %v3944_v37  ;;  %v4873_v13 = vand.u32 4294901760, %v3946_v38  ;;  %v4874_v22 = vand.u32 4294901760, %v3950_v40 }
  0x8c   : > { %v4875_v16 = vand.u32 4294901760, %v3952_v41  ;;  %v4877_v62 = vand.u32 4294901760, %v3959_v51  ;;  %v4878_v9 = vand.u32 4294901760, %v3961_v52  ;;  %v4879_v11 = vand.u32 4294901760, %v3966_v57 }
  0x8d   : > { %v4184_v47 = vpack.c.bf16 %v4872_v6, %v4871_v28  ;;  %v4190_v54 = vpack.c.bf16 %v4874_v22, %v4873_v13  ;;  %v4880_v0 = vand.u32 4294901760, %v3968_v58  ;;  %v4881_v31 = vand.u32 4294901760, %v3970_v59 }
  0x8e   : > { %3226 = vmatpush1.bf16.msra.mxu0 %v3225_v20  ;;  %v4876_v20 = vand.u32 4294901760, %v3957_v50  ;;  %v4202_v26 = vpack.c.bf16 %v4878_v9, %v4877_v62  ;;  %v4882_v42 = vand.u32 4294901760, %v3972_v60  ;;  %v4883_v45 = vand.u32 4294901760, %v3974_v1 }
  0x8f   : > { %3228 = vmatprep.subr.bf16.mxu0 %v3227_v53  ;;  %v4208_v10 = vpack.c.bf16 %v4880_v0, %v4879_v11  ;;  %v4884_v53 = vand.u32 4294901760, %v3976_v2  ;;  %v4885_v6 = vand.u32 4294901760, %v3984_v15  ;;  %v4886_v13 = vand.u32 4294901760, %v3986_v17 }
  0x90   : > { %v4196_v49 = vpack.c.bf16 %v4876_v20, %v4875_v16  ;;  %v4214_v35 = vpack.c.bf16 %v4882_v42, %v4881_v31  ;;  %v4887_v16 = vand.u32 4294901760, %v3988_v18  ;;  %v4888_v20 = vand.u32 4294901760, %v3990_v19 }
  0x91   : > { %v4220_v28 = vpack.c.bf16 %v4884_v53, %v4883_v45  ;;  %v4226_v22 = vpack.c.bf16 %v4886_v13, %v4885_v6  ;;  %v4890_v9 = vand.u32 4294901760, %v3994_v23  ;;  %v4891_v11 = vand.u32 4294901760, %v3998_v27 }
  0x92   : > { %v4232_v62 = vpack.c.bf16 %v4888_v20, %v4887_v16  ;;  %v4893_v31 = vand.u32 4294901760, %v4002_v29  ;;  %v4894_v42 = vand.u32 4294901760, %v4004_v30  ;;  %v4895_v53 = vand.u32 4294901760, %v4009_v33  ;;  %3230 = vmatpush1.bf16.msra.mxu0 %v3229_v43  ;;  %v213_v43 = vld [vmem:[#allocation5 + $0x58] sm:$0xff] }
  0x93   : > { %v4238_v0 = vpack.c.bf16 %v4891_v11, %v4890_v9  ;;  %v4896_v6 = vand.u32 4294901760, %v4011_v34  ;;  %v4897_v16 = vand.u32 4294901760, %v4015_v44  ;;  %v4256_v9 = vpack.c.bf16 %v539_v5, %v527_v8  ;;  %3232 = vmatprep.subr.bf16.mxu0 %v3231_v7  ;;  %v4269_v5 = vld [vmem:[#allocation5 + $0x40] sm:$0xff]  ;;  %v216_v7 = vld [vmem:[#allocation5 + $0x70] sm:$0xff] }
  0x94   : > { %4889 = vst [vmem:[#allocation33_spill] sm:$0xff] %v4232_v62  ;;  %v4244_v45 = vpack.c.bf16 %v4894_v42, %v4893_v31  ;;  %v565_v62 = vand.u32 4294901760, %v564_v12  ;;  %v4258_v11 = vpack.c.bf16 %v557_v25, %v545_v24  ;;  %v3235_v31 = vpack.c.bf16 %v559_v63, %v547_v4  ;;  %v219_v4 = vld [vmem:[#allocation5 + $0x88] sm:$0xff]  ;;  %v225_v12 = vld [vmem:[#allocation5 + $0xb8] sm:$0xff] }
  0x95   : > { %4892 = vst [vmem:[#allocation34_spill] sm:$0xff] %v4238_v0  ;;  %v4250_v13 = vpack.c.bf16 %v4896_v6, %v4895_v53  ;;  %v4254_v20 = vpack.c.bf16 %v533_v61, %v4897_v16  ;;  %v4260_v0 = vpack.c.bf16 %v563_v55, %v551_v39  ;;  %v3239_v53 = vpack.c.bf16 %v3944_v37, %v3942_v36  ;;  %v204_v55 = vld [vmem:[#allocation5 + $0x10] sm:$0xff]  ;;  %v207_v39 = vld [vmem:[#allocation5 + $0x28] sm:$0xff] }
  0x96   : > { %3234 = vmatpush1.bf16.msra.mxu0 %v3233_v21  ;;  %v3237_v42 = vpack.c.bf16 %v565_v62, %v553_v56  ;;  %v3241_v61 = vpack.c.bf16 %v3950_v40, %v3946_v38  ;;  %v3243_v8 = vpack.c.bf16 %v3957_v50, %v3952_v41  ;;  %v3245_v24 = vpack.c.bf16 %v3961_v52, %v3959_v51  ;;  %v222_v56 = vld [vmem:[#allocation5 + $0xa0] sm:$0xff] }
  0x97   : > { %3236 = vmatprep.subr.bf16.mxu0 %v3235_v31  ;;  %v4898_v25 = vmov 0.0   ;;  %v1123_v36 = vand.u32 4294901760, %v204_v55  ;;  %v1126_v37 = vand.u32 4294901760, %v207_v39  ;;  %v1129_v38 = vand.u32 4294901760, %v4269_v5 }
  0x98   : > { %v3247_v40 = vpack.c.bf16 %v3968_v58, %v3966_v57  ;;  %v4811_v41 = vmov 0.0|0.0   ;;  %v1132_v50 = vand.u32 4294901760, %v213_v43  ;;  %2937 = vmatprep.mubr.msk.f32.mxu1 %vm3756_vm0, %v4898_v25  ;;  %v3249_v51 = vpack.c.bf16 %v3972_v60, %v3970_v59 }
  0x99   : > { %3367 = vmatprep.subr.bf16.mxu1 %v4811_v41  ;;  %v4278_v63 = vpack.c.bf16 %v1126_v37, %v1123_v36  ;;  %v1135_v57 = vand.u32 4294901760, %v216_v7  ;;  %v1138_v58 = vand.u32 4294901760, %v219_v4  ;;  %v3251_v21 = vpack.c.bf16 %v3976_v2, %v3974_v1  ;;  %v4298_v1 = vld [vmem:[#allocation5 + $0xd0] sm:$0xff]  ;;  %v4300_v2 = vld [vmem:[#allocation5 + $0xe8] sm:$0xff] }
  0x9a   : > { %3238 = vmatpush1.bf16.msra.mxu0 %v3237_v42  ;;  %v4285_v52 = vpack.c.bf16 %v1132_v50, %v1129_v38  ;;  %v3253_v62 = vpack.c.bf16 %v3986_v17, %v3984_v15  ;;  %v1141_v60 = vand.u32 4294901760, %v222_v56  ;;  %v1144_v6 = vand.u32 4294901760, %v225_v12 }
  0x9b   : > { %3240 = vmatprep.subr.bf16.mxu0 %v3239_v53  ;;  %3369 = vmatpush3.bf16.msra.mxu1 %v4278_v63  ;;  %v4293_v59 = vpack.c.bf16 %v1138_v58, %v1135_v57  ;;  %v3255_v16 = vpack.c.bf16 %v3990_v19, %v3988_v18  ;;  %v3257_v15 = vpack.c.bf16 %v3998_v27, %v3994_v23  ;;  %v1147_v31 = vand.u32 4294901760, %v4298_v1  ;;  %v4312_v19 = vld [vmem:[#allocation5 + $0x100] sm:$0xff]  ;;  %v4314_v53 = vld [vmem:[#allocation5 + $0x118] sm:$0xff] }
  0x9c   : > { %3370 = vmatprep.subr.bf16.mxu1 %v4811_v41  ;;  %v4305_v17 = vpack.c.bf16 %v1144_v6, %v1141_v60  ;;  %v1150_v42 = vand.u32 4294901760, %v4300_v2  ;;  %v3259_v18 = vpack.c.bf16 %v4004_v30, %v4002_v29  ;;  %v3261_v23 = vpack.c.bf16 %v4011_v34, %v4009_v33  ;;  %v4334_v33 = vld [vmem:[#allocation5 + $0x130] sm:$0xff]  ;;  %v4336_v34 = vld [vmem:[#allocation5 + $0x148] sm:$0xff] }
  0x9d   : > { %601 = vmatmul.mubr.f32.vlgmr.msra.gmra.mrb[0].mxu0 %v4019_v48  ;;  %v4808_v29 = vand.u32 4294901760, %v4312_v19  ;;  %v4807_v30 = vand.u32 4294901760, %v4314_v53 }
  0x9e   : > { %3242 = vmatpush1.bf16.msra.mxu0 %v3241_v61  ;;  %735 = vmatprep.mubr.f32.mxu0 %v4898_v25  ;;  %4899 = vst [vmem:[#allocation35_spill] sm:$0xff] %v4305_v17  ;;  %v4323_v27 = vpack.c.bf16 %v1150_v42, %v1147_v31  ;;  %v4901_v61 = vld [vmem:[#allocation24_spill] sm:$0xff] }
  0x9f   : > { %3244 = vmatprep.subr.bf16.mxu0 %v3243_v8  ;;  %3372 = vmatpush3.bf16.msra.mxu1 %v4285_v52  ;;  %v3263_v8 = vpack.c.bf16 %v4901_v61, %v4015_v44  ;;  %v4345_v44 = vsub.f32 %v213_v43, %v1132_v50  ;;  %v4364_v43 = vsub.f32 %v222_v56, %v1141_v60 }
  0xa0   : > { %3373 = vmatprep.subr.bf16.mxu1 %v4811_v41  ;;  %4900 = vst [vmem:[#allocation36_spill] sm:$0xff] %v4323_v27 }
  0xa2   : > { %3246 = vmatpush1.bf16.msra.mxu0 %v3245_v24  ;;  %v4329_v24 = vsub.f32 %v204_v55, %v1123_v36  ;;  %v4347_v55 = vsub.f32 %v216_v7, %v1135_v57  ;;  %v4356_v36 = vpack.c.bf16 %v4807_v30, %v4808_v29  ;;  %v4912_v29 = vld [vmem:[#allocation28_spill] sm:$0xff] }
  0xa3   : > { %3248 = vmatprep.subr.bf16.mxu0 %v3247_v40  ;;  %3375 = vmatpush3.bf16.msra.mxu1 %v4293_v59  ;;  %v4331_v40 = vsub.f32 %v207_v39, %v1126_v37  ;;  %v4349_v39 = vsub.f32 %v219_v4, %v1138_v58  ;;  %v4362_v37 = vld [vmem:[#allocation5 + $0x178] sm:$0xff]  ;;  %v3269_v4 = vpack.c.bf16 %v4143_v46, %v4114_v14 }
  0xa4   : > { %3376 = vmatprep.subr.bf16.mxu1 %v4811_v41  ;;  %4904 = vst [vmem:[#allocation24_spill] sm:$0xff] %v4356_v36  ;;  %v1216_v50 = vand.u32 4294901760, %v4329_v24  ;;  %v4809_v58 = vand.u32 4294901760, %v4362_v37  ;;  %v1244_v60 = vand.u32 4294901760, %v4347_v55 }
  0xa5   : > { %v1223_v7 = vand.u32 4294901760, %v4331_v40  ;;  %v1251_v14 = vand.u32 4294901760, %v4349_v39 }
  0xa6   : > { %3250 = vmatpush1.bf16.msra.mxu0 %v3249_v51  ;;  %v4902_v51 = vld [vmem:[#allocation26_spill] sm:$0xff]  ;;  %v1217_v46 = vsub.f32 %v4329_v24, %v1216_v50 }
  0xa7   : > { %3252 = vmatprep.subr.bf16.mxu0 %v3251_v21  ;;  %3378 = vmatpush3.bf16.msra.mxu1 %v4305_v17  ;;  %v4903_v21 = vld [vmem:[#allocation27_spill] sm:$0xff] }
  0xa8   : > { %3379 = vmatprep.subr.bf16.mxu1 %v4811_v41  ;;  %v4933_v17 = vld [vmem:[#allocation23_spill] sm:$0xff] }
  0xaa   : > { %3254 = vmatpush1.bf16.msra.mxu0 %v3253_v62  ;;  %v3265_v62 = vpack.c.bf16 %v4903_v21, %v4902_v51  ;;  %v4395_v21 = vpack.c.bf16 %v1251_v14, %v1244_v60 }
  0xab   : > { %3256 = vmatprep.subr.bf16.mxu0 %v3255_v16  ;;  %v3267_v16 = vpack.c.bf16 %v4070_v32, %v4068_v3  ;;  %3381 = vmatpush3.bf16.msra.mxu1 %v4323_v27  ;;  %v4806_v32 = vand.u32 4294901760, %v4334_v33  ;;  %v4805_v3 = vand.u32 4294901760, %v4336_v34 }
  0xac   : > { %3382 = vmatprep.subr.bf16.mxu1 %v4811_v41  ;;  %4908 = vst [vmem:[#allocation38_spill] sm:$0xff] %v4395_v21  ;;  %v4915_v21 = vmov 0.0|0.0  }
  0xad   : > { %v4381_v56 = vpack.c.bf16 %v4805_v3, %v4806_v32  ;;  %v4910_v3 = vld [vmem:[#allocation11_spill] sm:$0xff] }
  0xae   : > { %3258 = vmatpush1.bf16.msra.mxu0 %v3257_v15  ;;  %v4343_v15 = vsub.f32 %v4269_v5, %v1129_v38  ;;  %v4360_v5 = vld [vmem:[#allocation5 + $0x160] sm:$0xff]  ;;  %v4366_v38 = vsub.f32 %v225_v12, %v1144_v6  ;;  %v1237_v12 = vand.u32 4294901760, %v4345_v44  ;;  %v1224_v6 = vsub.f32 %v4331_v40, %v1223_v7 }
  0xaf   : > { %3260 = vmatprep.subr.bf16.mxu0 %v3259_v18  ;;  %v4810_v57 = vand.u32 4294901760, %v4360_v5  ;;  %3384 = vmatpush3.bf16.msra.mxu1 %v4356_v36  ;;  %4905 = vst [vmem:[#allocation26_spill] sm:$0xff] %v4381_v56 }
  0xb0   : > { %v1230_v18 = vand.u32 4294901760, %v4343_v15  ;;  %3385 = vmatprep.subr.bf16.mxu1 %v4811_v41  ;;  %v1265_v61 = vand.u32 4294901760, %v4366_v38  ;;  %v1225_v32 = vand.u32 4294901760, %v1224_v6  ;;  %v1238_v30 = vsub.f32 %v4345_v44, %v1237_v12  ;;  %v4914_v6 = vld [vmem:[#allocation13_spill] sm:$0xff] }
  0xb2   : > { %3262 = vmatpush1.bf16.msra.mxu0 %v3261_v23  ;;  %v1258_v23 = vand.u32 4294901760, %v4364_v43  ;;  %v4393_v51 = vpack.c.bf16 %v1237_v12, %v1230_v18 }
  0xb3   : > { %3264 = vmatprep.subr.bf16.mxu0 %v3263_v8  ;;  %v4391_v8 = vpack.c.bf16 %v1223_v7, %v1216_v50  ;;  %3387 = vmatpush3.bf16.msra.mxu1 %v4381_v56  ;;  %v4407_v50 = vpack.c.bf16 %v4809_v58, %v4810_v57  ;;  %v1218_v7 = vand.u32 4294901760, %v1217_v46  ;;  %v4421_v58 = vsub.f32 %v4300_v2, %v1150_v42  ;;  %v4917_v2 = vld [vmem:[#allocation14_spill] sm:$0xff] }
  0xb4   : > { %4907 = vst [vmem:[#allocation37_spill] sm:$0xff] %v4393_v51  ;;  %3388 = vmatprep.subr.bf16.mxu1 %v4811_v41  ;;  %v1239_v57 = vand.u32 4294901760, %v1238_v30  ;;  %v1245_v41 = vsub.f32 %v4347_v55, %v1244_v60  ;;  %v4918_v42 = vand.u32 4294901760, %v4314_v53  ;;  %v1259_v30 = vsub.f32 %v4364_v43, %v1258_v23 }
  0xb5   : > { %4906 = vst [vmem:[#allocation27_spill] sm:$0xff] %v4391_v8  ;;  %4911 = vst [vmem:[#allocation11_spill] sm:$0xff] %v4407_v50  ;;  %v3392_v12 = vpack.c.bf16 %v1225_v32, %v1218_v7  ;;  %v4919_v32 = vld [vmem:[#allocation32_spill] sm:$0xff]  ;;  %v1266_v60 = vsub.f32 %v4366_v38, %v1265_v61  ;;  %v4920_v7 = vld [vmem:[#allocation15_spill] sm:$0xff]  ;;  %v4815_v8 = vand.u32 4294901760, %v4421_v58 }
  0xb6   : > { %3266 = vmatpush1.bf16.msra.mxu0 %v3265_v62  ;;  %v4397_v62 = vpack.c.bf16 %v1265_v61, %v1258_v23  ;;  %v4922_v61 = vld [vmem:[#allocation16_spill] sm:$0xff] }
  0xb7   : > { %3268 = vmatprep.subr.bf16.mxu0 %v3267_v16  ;;  %v1231_v16 = vsub.f32 %v4343_v15, %v1230_v18  ;;  %v4416_v18 = vsub.f32 %v4298_v1, %v1147_v31  ;;  %3390 = vmatpush3.bf16.msra.mxu1 %v4407_v50  ;;  %v4916_v1 = vand.u32 4294901760, %v4312_v19 }
  0xb8   : > { %4909 = vst [vmem:[#allocation39_spill] sm:$0xff] %v4397_v62  ;;  %v1252_v62 = vsub.f32 %v4349_v39, %v1251_v14  ;;  %3391 = vmatprep.subr.bf16.mxu1 %v4915_v21 }
  0xb9   : > { %v1232_v46 = vand.u32 4294901760, %v1231_v16  ;;  %v4431_v31 = vsub.f32 %v4312_v19, %v4916_v1  ;;  %v4437_v16 = vsub.f32 %v4314_v53, %v4918_v42  ;;  %v4816_v14 = vand.u32 4294901760, %v4416_v18 }
  0xba   : > { %3270 = vmatpush1.bf16.msra.mxu0 %v3269_v4  ;;  %v4913_v4 = vld [vmem:[#allocation12_spill] sm:$0xff]  ;;  %2938 = vmatmul.mubr.f32.vlgmr.msra.gmra.mrb[0].mxu1 %v4919_v32  ;;  %v1246_v1 = vand.u32 4294901760, %v1245_v41  ;;  %v1253_v51 = vand.u32 4294901760, %v1252_v62  ;;  %v4921_v53 = vand.u32 4294901760, %v4334_v33  ;;  %v4923_v42 = vand.u32 4294901760, %v4336_v34 }
  0xbb   : > { %3272 = vmatprep.subr.bf16.mxu0 %v4910_v3  ;;  %3393 = vmatpush3.bf16.msra.mxu1 %v3392_v12  ;;  %v3395_v19 = vpack.c.bf16 %v1239_v57, %v1232_v46  ;;  %v1260_v41 = vand.u32 4294901760, %v1259_v30  ;;  %v1267_v62 = vand.u32 4294901760, %v1266_v60  ;;  %v4821_v46 = vand.u32 4294901760, %v4431_v31  ;;  %v4924_v12 = vld [vmem:[#allocation17_spill] sm:$0xff]  ;;  %v4926_v60 = vld [vmem:[#allocation18_spill] sm:$0xff] }
  0xbc   : > { %3394 = vmatprep.subr.bf16.mxu1 %v4915_v21  ;;  %2972 = vmatprep.mubr.msk.f32.mxu1 %vm3756_vm0, %v4898_v25  ;;  %v4451_v23 = vsub.f32 %v4334_v33, %v4921_v53  ;;  %v4457_v57 = vsub.f32 %v4336_v34, %v4923_v42  ;;  %v3398_v32 = vpack.c.bf16 %v1253_v51, %v1246_v1  ;;  %v4925_v34 = vand.u32 4294901760, %v4360_v5 }
  0xbd   : > { %738 = vmatmul.mubr.f32.vlgmr.msra.gmra.mrb[0].mxu0 %v4912_v29  ;;  %v1273_v33 = vsub.f32 %v4416_v18, %v4816_v14  ;;  %v1280_v53 = vsub.f32 %v4421_v58, %v4815_v8  ;;  %v4927_v51 = vand.u32 4294901760, %v4362_v37  ;;  %v3401_v1 = vpack.c.bf16 %v1267_v62, %v1260_v41  ;;  %v4928_v14 = vld [vmem:[#allocation19_spill] sm:$0xff] }
  0xbe   : > { %3274 = vmatpush1.bf16.msra.mxu0 %v4913_v4  ;;  %840 = vmatprep.mubr.f32.mxu0 %v4898_v25  ;;  %v4472_v30 = vsub.f32 %v4360_v5, %v4925_v34  ;;  %v1287_v42 = vsub.f32 %v4431_v31, %v4821_v46  ;;  %v4826_v8 = vand.u32 4294901760, %v4451_v23  ;;  %v4929_v34 = vand.u32 4294901760, %v4437_v16 }
  0xbf   : > { %3276 = vmatprep.subr.bf16.mxu0 %v4914_v6  ;;  %3396 = vmatpush3.bf16.msra.mxu1 %v3395_v19  ;;  %v4478_v19 = vsub.f32 %v4362_v37, %v4927_v51  ;;  %v1274_v50 = vand.u32 4294901760, %v1273_v33  ;;  %v1281_v5 = vand.u32 4294901760, %v1280_v53  ;;  %v4827_v36 = vand.u32 4294901760, %v4457_v57  ;;  %v4930_v37 = vld [vmem:[#allocation20_spill] sm:$0xff] }
  0xc0   : > { %3397 = vmatprep.subr.bf16.mxu1 %v4915_v21  ;;  %v1294_v56 = vsub.f32 %v4437_v16, %v4929_v34  ;;  %v1288_v41 = vand.u32 4294901760, %v1287_v42  ;;  %v1301_v62 = vsub.f32 %v4451_v23, %v4826_v8  ;;  %v4932_v42 = vld [vmem:[#allocation22_spill] sm:$0xff] }
  0xc1   : > { %v3404_v33 = vpack.c.bf16 %v1281_v5, %v1274_v50  ;;  %v1308_v34 = vsub.f32 %v4457_v57, %v4827_v36  ;;  %v1321_v46 = vand.u32 4294901760, %v4478_v19  ;;  %v4935_v5 = vld [vmem:[#allocation25_spill] sm:$0xff]  ;;  %v4936_v36 = vld [vmem:[#allocation30_spill] sm:$0xff] }
  0xc2   : > { %3278 = vmatpush1.bf16.msra.mxu0 %v4917_v2  ;;  %v1295_v53 = vand.u32 4294901760, %v1294_v56  ;;  %v1302_v27 = vand.u32 4294901760, %v1301_v62 }
  0xc3   : > { %3280 = vmatprep.subr.bf16.mxu0 %v4920_v7  ;;  %3399 = vmatpush3.bf16.msra.mxu1 %v3398_v32  ;;  %v4931_v32 = vld [vmem:[#allocation21_spill] sm:$0xff]  ;;  %v1309_v51 = vand.u32 4294901760, %v1308_v34  ;;  %v1322_v50 = vsub.f32 %v4478_v19, %v1321_v46 }
  0xc4   : > { %3400 = vmatprep.subr.bf16.mxu1 %v4915_v21  ;;  %v3407_v8 = vpack.c.bf16 %v1295_v53, %v1288_v41  ;;  %v4937_v41 = vld [vmem:[#allocation31_spill] sm:$0xff]  ;;  %v4938_v34 = vld [vmem:[#allocation29_spill] sm:$0xff] }
  0xc5   : > { %v3410_v62 = vpack.c.bf16 %v1309_v51, %v1302_v27  ;;  %v3416_v27 = vpack.c.bf16 %v4331_v40, %v4329_v24  ;;  %v4948_v24 = vld [vmem:[#allocation37_spill] sm:$0xff]  ;;  %v4949_v40 = vld [vmem:[#allocation38_spill] sm:$0xff] }
  0xc6   : > { %3282 = vmatpush1.bf16.msra.mxu0 %v4922_v61 }
  0xc7   : > { %3284 = vmatprep.subr.bf16.mxu0 %v4924_v12  ;;  %3402 = vmatpush3.bf16.msra.mxu1 %v3401_v1  ;;  %v4934_v1 = vand.u32 4294901760, %v4472_v30 }
  0xc8   : > { %3403 = vmatprep.subr.bf16.mxu1 %v4915_v21 }
  0xc9   : > { %v1315_v56 = vsub.f32 %v4472_v30, %v4934_v1 }
  0xca   : > { %3286 = vmatpush1.bf16.msra.mxu0 %v4926_v60 }
  0xcb   : > { %3288 = vmatprep.subr.bf16.mxu0 %v4928_v14  ;;  %3405 = vmatpush3.bf16.msra.mxu1 %v3404_v33  ;;  %v1323_v33 = vand.u32 4294901760, %v1322_v50 }
  0xcc   : > { %3406 = vmatprep.subr.bf16.mxu1 %v4915_v21 }
  0xce   : > { %3290 = vmatpush1.bf16.msra.mxu0 %v4930_v37 }
  0xcf   : > { %3292 = vmatprep.subr.bf16.mxu0 %v4931_v32  ;;  %3408 = vmatpush3.bf16.msra.mxu1 %v3407_v8  ;;  %v4956_v8 = vand.u32 4294901760, %v4457_v57 }
  0xd0   : > { %3409 = vmatprep.subr.bf16.mxu1 %v4915_v21 }
  0xd2   : > { %3294 = vmatpush1.bf16.msra.mxu0 %v4932_v42 }
  0xd3   : > { %3296 = vmatprep.subr.bf16.mxu0 %v4933_v17  ;;  %v1316_v17 = vand.u32 4294901760, %v1315_v56  ;;  %3411 = vmatpush3.bf16.msra.mxu1 %v3410_v62 }
  0xd4   : > { %3412 = vmatprep.subr.bf16.mxu1 %v4915_v21 }
  0xd5   : > { %v3413_v53 = vpack.c.bf16 %v1323_v33, %v1316_v17  ;;  %v4946_v17 = vld [vmem:[#allocation11_spill] sm:$0xff] }
  0xd6   : > { %3298 = vmatpush1.bf16.msra.mxu0 %v4935_v5 }
  0xd7   : > { %3300 = vmatprep.subr.bf16.mxu0 %v4936_v36  ;;  %3414 = vmatpush3.bf16.msra.mxu1 %v3413_v53 }
  0xd8   : > { %3415 = vmatprep.subr.bf16.mxu1 %v4915_v21 }
  0xda   : > { %3302 = vmatpush1.bf16.msra.mxu0 %v4937_v41  ;;  %2973 = vmatmul.mubr.f32.vlgmr.msra.gmra.mrb[0].mxu1 %v4019_v48 }
  0xdb   : > { %3304 = vmatprep.subr.bf16.mxu0 %v4184_v47  ;;  %3417 = vmatpush3.bf16.msra.mxu1 %v3416_v27  ;;  %v3419_v47 = vpack.c.bf16 %v4345_v44, %v4343_v15  ;;  %v4950_v15 = vld [vmem:[#allocation39_spill] sm:$0xff]  ;;  %v4951_v44 = vand.u32 4294901760, %v4416_v18 }
  0xdc   : > { %3418 = vmatprep.subr.bf16.mxu1 %v4915_v21  ;;  %3007 = vmatprep.mubr.msk.f32.mxu1 %vm3756_vm0, %v4898_v25 }
  0xdd   : > { %844 = vmatmul.mubr.f32.vlgmr.msra.gmra.mrb[0].mxu0 %v4938_v34 }
  0xde   : > { %3306 = vmatpush1.bf16.msra.mxu0 %v4190_v54  ;;  %1010 = vmatprep.mubr.f32.mxu0 %v4898_v25  ;;  %v3422_v54 = vpack.c.bf16 %v4349_v39, %v4347_v55  ;;  %v4952_v55 = vand.u32 4294901760, %v4421_v58 }
  0xdf   : > { %3308 = vmatprep.subr.bf16.mxu0 %v4196_v49  ;;  %3420 = vmatpush3.bf16.msra.mxu1 %v3419_v47  ;;  %v4939_v49 = vld [vmem:[#allocation33_spill] sm:$0xff] }
  0xe0   : > { %3421 = vmatprep.subr.bf16.mxu1 %v4915_v21  ;;  %v3476_v39 = vpack.c.bf16 %v4952_v55, %v4951_v44 }
  0xe2   : > { %3310 = vmatpush1.bf16.msra.mxu0 %v4202_v26  ;;  %v3425_v26 = vpack.c.bf16 %v4366_v38, %v4364_v43  ;;  %v4955_v38 = vand.u32 4294901760, %v4451_v23 }
  0xe3   : > { %3312 = vmatprep.subr.bf16.mxu0 %v4208_v10  ;;  %3423 = vmatpush3.bf16.msra.mxu1 %v3422_v54  ;;  %v4940_v10 = vld [vmem:[#allocation34_spill] sm:$0xff] }
  0xe4   : > { %3424 = vmatprep.subr.bf16.mxu1 %v4915_v21 }
  0xe6   : > { %3314 = vmatpush1.bf16.msra.mxu0 %v4214_v35  ;;  %v3428_v35 = vpack.c.bf16 %v4421_v58, %v4416_v18  ;;  %v4957_v58 = vmov %v4934_v1 }
  0xe7   : > { %3316 = vmatprep.subr.bf16.mxu0 %v4220_v28  ;;  %3426 = vmatpush3.bf16.msra.mxu1 %v3425_v26  ;;  %v3431_v28 = vpack.c.bf16 %v4437_v16, %v4431_v31  ;;  %v3485_v18 = vpack.c.bf16 %v1321_v46, %v4957_v58 }
  0xe8   : > { %3427 = vmatprep.subr.bf16.mxu1 %v4915_v21 }
  0xea   : > { %3318 = vmatpush1.bf16.msra.mxu0 %v4226_v22  ;;  %v3434_v22 = vpack.c.bf16 %v4457_v57, %v4451_v23 }
  0xeb   : > { %3320 = vmatprep.subr.bf16.mxu0 %v4939_v49  ;;  %3429 = vmatpush3.bf16.msra.mxu1 %v3428_v35 }
  0xec   : > { %3430 = vmatprep.subr.bf16.mxu1 %v4915_v21 }
  0xee   : > { %3322 = vmatpush1.bf16.msra.mxu0 %v4940_v10 }
  0xef   : > { %3324 = vmatprep.subr.bf16.mxu0 %v4244_v45  ;;  %3432 = vmatpush3.bf16.msra.mxu1 %v3431_v28  ;;  %v3437_v45 = vpack.c.bf16 %v4478_v19, %v4472_v30 }
  0xf0   : > { %3433 = vmatprep.subr.bf16.mxu1 %v4915_v21 }
  0xf2   : > { %3326 = vmatpush1.bf16.msra.mxu0 %v4250_v13  ;;  %v4942_v13 = vld [vmem:[#allocation23_spill] sm:$0xff] }
  0xf3   : > { %3328 = vmatprep.subr.bf16.mxu0 %v4254_v20  ;;  %3435 = vmatpush3.bf16.msra.mxu1 %v3434_v22  ;;  %v4943_v20 = vld [vmem:[#allocation36_spill] sm:$0xff] }
  0xf4   : > { %3436 = vmatprep.subr.bf16.mxu1 %v4915_v21 }
  0xf6   : > { %3330 = vmatpush1.bf16.msra.mxu0 %v4256_v9  ;;  %v4944_v9 = vld [vmem:[#allocation24_spill] sm:$0xff] }
  0xf7   : > { %3332 = vmatprep.subr.bf16.mxu0 %v4258_v11  ;;  %3438 = vmatpush3.bf16.msra.mxu1 %v3437_v45  ;;  %v4945_v11 = vld [vmem:[#allocation26_spill] sm:$0xff] }
  0xf8   : > { %3439 = vmatprep.subr.bf16.mxu1 %v4915_v21 }
  0xfa   : > { %3334 = vmatpush1.bf16.msra.mxu0 %v4260_v0  ;;  %3008 = vmatmul.mubr.f32.vlgmr.msra.gmra.mrb[0].mxu1 %v4912_v29  ;;  %v4941_v0 = vld [vmem:[#allocation35_spill] sm:$0xff] }
  0xfb   : > { %3336 = vmatprep.subr.bf16.mxu0 %v4910_v3  ;;  %3441 = vmatpush3.bf16.msra.mxu1 %v4278_v63  ;;  %v4947_v29 = vld [vmem:[#allocation27_spill] sm:$0xff]  ;;  %v4954_v3 = vand.u32 4294901760, %v4437_v16 }
  0xfc   : > { %3442 = vmatprep.subr.bf16.mxu1 %v4915_v21  ;;  %3042 = vmatprep.mubr.msk.f32.mxu1 %vm3756_vm0, %v4898_v25 }
  0xfd   : > { %1012 = vmatmul.mubr.f32.vlgmr.msra.gmra.mrb[0].mxu0 %v4019_v48 }
  0xfe   : > { %3338 = vmatpush1.bf16.msra.mxu0 %v4913_v4  ;;  %1114 = vmatprep.mubr.f32.mxu0 %v4898_v25  ;;  %v3482_v4 = vpack.c.bf16 %v4956_v8, %v4955_v38 }
  0xff   : > { %3340 = vmatprep.subr.bf16.mxu0 %v4914_v6  ;;  %3444 = vmatpush3.bf16.msra.mxu1 %v4285_v52  ;;  %v250_v6 = vld [vmem:[%s4740_s2] sm:$0x7] }
 0x100   : > { %3445 = vmatprep.subr.bf16.mxu1 %v4915_v21 }
 0x102   : > { %3342 = vmatpush1.bf16.msra.mxu0 %v4917_v2 }
 0x103   : > { %3344 = vmatprep.subr.bf16.mxu0 %v4920_v7  ;;  %3447 = vmatpush3.bf16.msra.mxu1 %v4293_v59 }
 0x104   : > { %3448 = vmatprep.subr.bf16.mxu1 %v4915_v21 }
 0x106   : > { %3346 = vmatpush1.bf16.msra.mxu0 %v4922_v61 }
 0x107   : > { %3348 = vmatprep.subr.bf16.mxu0 %v4924_v12  ;;  %3450 = vmatpush3.bf16.msra.mxu1 %v4941_v0 }
 0x108   : > { %3451 = vmatprep.subr.bf16.mxu1 %v4915_v21 }
 0x10a   : > { %3350 = vmatpush1.bf16.msra.mxu0 %v4926_v60 }
 0x10b   : > { %3352 = vmatprep.subr.bf16.mxu0 %v4928_v14  ;;  %3453 = vmatpush3.bf16.msra.mxu1 %v4943_v20 }
 0x10c   : > { %3454 = vmatprep.subr.bf16.mxu1 %v4915_v21 }
 0x10e   : > { %3354 = vmatpush1.bf16.msra.mxu0 %v4930_v37 }
 0x10f   : > { %3356 = vmatprep.subr.bf16.mxu0 %v4931_v32  ;;  %3456 = vmatpush3.bf16.msra.mxu1 %v4944_v9 }
 0x110   : > { %3457 = vmatprep.subr.bf16.mxu1 %v4915_v21 }
 0x112   : > { %3358 = vmatpush1.bf16.msra.mxu0 %v4932_v42 }
 0x113   : > { %3360 = vmatprep.subr.bf16.mxu0 %v4942_v13  ;;  %3459 = vmatpush3.bf16.msra.mxu1 %v4945_v11 }
 0x114   : > { %3460 = vmatprep.subr.bf16.mxu1 %v4915_v21 }
 0x116   : > { %3362 = vmatpush1.bf16.msra.mxu0 %v4935_v5 }
 0x117   : > { %3364 = vmatprep.subr.bf16.mxu0 %v4936_v36  ;;  %3462 = vmatpush3.bf16.msra.mxu1 %v4946_v17  ;;  %v4953_v36 = vand.u32 4294901760, %v4431_v31 }
 0x118   : > { %3463 = vmatprep.subr.bf16.mxu1 %v4915_v21 }
 0x119   : > { %v3479_v43 = vpack.c.bf16 %v4954_v3, %v4953_v36 }
 0x11a   : > { %3366 = vmatpush1.bf16.msra.mxu0 %v4937_v41  ;;  %3043 = vmatmul.mubr.f32.vlgmr.msra.gmra.mrb[0].mxu1 %v4938_v34 }
 0x11b   : > { %3115 = vmatprep.subr.mxu0 %v4898_v25  ;;  %3465 = vmatpush3.bf16.msra.mxu1 %v4947_v29 }
 0x11c   : > { %3077 = vmatprep.mubr.msk.f32.mxu1 %vm3756_vm0, %v4898_v25  ;;  %3466 = vmatprep.subr.bf16.mxu1 %v4915_v21 }
 0x11d   : > { %1116 = vmatmul.mubr.f32.vlgmr.msra.gmra.mrb[0].mxu0 %v4019_v48 }
 0x11e   : > { %3117 = vmatprep.mubr.msk.f32.mxu0 %vm3756_vm0, %v4898_v25 }
 0x11f   : > { %3468 = vmatpush3.bf16.msra.mxu1 %v4948_v24 }
 0x120   : > { %3469 = vmatprep.subr.bf16.mxu1 %v4915_v21 }
 0x123   : > { %3471 = vmatpush3.bf16.msra.mxu1 %v4949_v40 }
 0x124   : > { %3472 = vmatprep.subr.bf16.mxu1 %v4915_v21 }
 0x127   : > { %3474 = vmatpush3.bf16.msra.mxu1 %v4950_v15 }
 0x128   : > { %3475 = vmatprep.subr.bf16.mxu1 %v4915_v21 }
 0x12b   : > { %3477 = vmatpush3.bf16.msra.mxu1 %v3476_v39 }
 0x12c   : > { %3478 = vmatprep.subr.bf16.mxu1 %v4915_v21 }
 0x12f   : > { %3480 = vmatpush3.bf16.msra.mxu1 %v3479_v43 }
 0x130   : > { %3481 = vmatprep.subr.bf16.mxu1 %v4915_v21 }
 0x133   : > { %3483 = vmatpush3.bf16.msra.mxu1 %v3482_v4 }
 0x134   : > { %3484 = vmatprep.subr.bf16.mxu1 %v4915_v21 }
 0x137   : > { %3486 = vmatpush3.bf16.msra.mxu1 %v3485_v18 }
 0x138   : > { %3487 = vmatprep.subr.bf16.mxu1 %v4915_v21 }
 0x13a   : > { %3078 = vmatmul.mubr.f32.vlgmr.msra.gmra.mrb[0].mxu1 %v4019_v48 }
 0x13b   : > { %3489 = vmatpush3.bf16.msra.mxu1 %v4278_v63  ;;  %3112 = vmatprep.mubr.msk.f32.mxu1 %vm3756_vm0, %v4898_v25  ;;  %v252_v63 = vlaneseq }
 0x13c   : > { %3490 = vmatprep.subr.bf16.mxu1 %v4915_v21 }
 0x13f   : > { %3492 = vmatpush3.bf16.msra.mxu1 %v4285_v52  ;;  %v253_v52 = vshrl.u32 %v252_v63, 7 }
 0x140   : > { %3493 = vmatprep.subr.bf16.mxu1 %v4915_v21 }
 0x141   : > { %v258_v31 = vsub.s32 1, %v253_v52  ;;  %v262_v32 = vsub.s32 2, %v253_v52 }
 0x143   : > { %3495 = vmatpush3.bf16.msra.mxu1 %v4293_v59  ;;  %v254_v59 = vsub.s32 0, %v253_v52  ;;  %v259_v16 = vrot.slane %v250_v6, %v258_v31  ;;  %v263_v42 = vrot.slane %v250_v6, %v262_v32 }
 0x144   : > { %3496 = vmatprep.subr.bf16.mxu1 %v4915_v21 }
 0x145   : > { %v255_v2 = vrot.slane %v250_v6, %v254_v59 }
 0x147   : > { %3498 = vmatpush3.bf16.msra.mxu1 %v4941_v0 }
 0x148   : > { %3499 = vmatprep.subr.bf16.mxu1 %v4915_v21 }
 0x14b   : > { %3501 = vmatpush3.bf16.msra.mxu1 %v4943_v20 }
 0x14c   : > { %3502 = vmatprep.subr.bf16.mxu1 %v4915_v21 }
 0x14f   : > { %3504 = vmatpush3.bf16.msra.mxu1 %v4944_v9 }
 0x150   : > { %3505 = vmatprep.subr.bf16.mxu1 %v4915_v21 }
 0x153   : > { %3507 = vmatpush3.bf16.msra.mxu1 %v4945_v11 }
 0x154   : > { %3508 = vmatprep.subr.bf16.mxu1 %v4915_v21 }
 0x157   : > { %3510 = vmatpush3.bf16.msra.mxu1 %v4946_v17 }
 0x158   : > { %3145 = vmatprep.subr.mxu1 %v4898_v25 }
 0x15a   : > { %3113 = vmatmul.mubr.f32.vlgmr.msra.gmra.mrb[0].mxu1 %v4019_v48 }
 0x15b   : > { %3147 = vmatprep.mubr.msk.f32.mxu1 %vm3756_vm0, %v4898_v25 }
 0x1f0   : > { %v1117_v21 = vpop.f32.mrb[0].mxu0 }
 0x1f1   : > { %v3511_v14 = vadd.f32 %v1117_v21, %v255_v2  ;;  %v1119_v7 = vpop.f32.mrb[1].mxu0 }
 0x1f2   : > { %v3512_v23 = vadd.f32 %v1119_v7, %v259_v16 }
 0x1f3   : > { %v1829_v61 = vand.u32 4294901760, %v3511_v14 }
 0x1f4   : > { %v1764_v57 = vand.u32 4294901760, %v3512_v23 }
 0x1f5   : > { %v1830_v48 = vsub.f32 %v3511_v14, %v1829_v61 }
 0x1f6   : > { %v1841_v46 = vsub.f32 %v3512_v23, %v1764_v57  ;;  %3116 = vmatpush3.xpose.msra.mxu0 %v1764_v57 }
 0x1f7   : > { %v1831_v12 = vand.u32 4294901760, %v1830_v48  ;;  %3120 = vmatprep.subr.mxu0 %v4898_v25 }
 0x1f8   : > { %v1842_v30 = vand.u32 4294901760, %v1841_v46 }
 0x1f9   : > { %v1832_v60 = vsub.f32 %v1830_v48, %v1831_v12 }
 0x1fa   : > { %v1843_v19 = vsub.f32 %v1841_v46, %v1842_v30 }
 0x1fb   : > { %v1833_v37 = vand.u32 4294901760, %v1832_v60 }
 0x1fc   : > { %v1844_v51 = vand.u32 4294901760, %v1843_v19 }
 0x1fd   : > { %3118 = vmatmul.mubr.f32.vlgmr.msra.gmra.mrb[2].mxu0 %v1833_v37 }
 0x1fe   : > { %3121 = vmatpush3.xpose.msra.mxu0 %v1844_v51  ;;  %3122 = vmatprep.mubr.msk.f32.mxu0 %vm3756_vm0, %v4898_v25 }
 0x1ff   : > { %3125 = vmatprep.subr.mxu0 %v4898_v25 }
 0x205   : > { %3123 = vmatmul.mubr.f32.vlgmr.msra.gmra.mrb[2].mxu0 %v1829_v61 }
 0x206   : > { %3126 = vmatpush3.xpose.msra.mxu0 %v1841_v46  ;;  %3127 = vmatprep.mubr.msk.f32.mxu0 %vm3756_vm0, %v4898_v25 }
 0x207   : > { %3130 = vmatprep.subr.mxu0 %v4898_v25 }
 0x20d   : > { %3128 = vmatmul.mubr.f32.vlgmr.msra.gmra.mrb[2].mxu0 %v1830_v48 }
 0x20e   : > { %3131 = vmatpush3.xpose.msra.mxu0 %v1764_v57  ;;  %3132 = vmatprep.mubr.msk.f32.mxu0 %vm3756_vm0, %v4898_v25 }
 0x20f   : > { %3135 = vmatprep.subr.mxu0 %v4898_v25 }
 0x215   : > { %3133 = vmatmul.mubr.f32.vlgmr.msra.gmra.mrb[2].mxu0 %v1831_v12 }
 0x216   : > { %3136 = vmatpush3.xpose.msra.mxu0 %v1842_v30  ;;  %3137 = vmatprep.mubr.msk.f32.mxu0 %vm3756_vm0, %v4898_v25 }
 0x217   : > { %3140 = vmatprep.subr.mxu0 %v4898_v25 }
 0x21d   : > { %3138 = vmatmul.mubr.f32.vlgmr.msra.gmra.mrb[2].mxu0 %v1829_v61 }
 0x21e   : > { %3141 = vmatpush3.xpose.msra.mxu0 %v1764_v57  ;;  %3142 = vmatprep.mubr.msk.f32.mxu0 %vm3756_vm0, %v4898_v25 }
 0x225   : > { %3143 = vmatmul.mubr.f32.vlgmr.msra.gmra.mrb[2].mxu0 %v1829_v61 }
 0x22d   : > { %v1759_v1 = vpop.f32.mrb[0].mxu1 }
 0x22e   : > { %v3513_v56 = vadd.f32 %v1759_v1, %v263_v42  ;;  %v3114_v50 = vpop.f32.mrb[1].mxu1 }
 0x230   : > { %v2223_v5 = vand.u32 4294901760, %v3513_v56 }
 0x232   : > { %3146 = vmatpush3.msra.mxu1 %v2223_v5  ;;  %v2300_v47 = vsub.f32 %v3513_v56, %v2223_v5 }
 0x233   : > { %3150 = vmatprep.subr.mxu1 %v4898_v25 }
 0x234   : > { %v2301_v35 = vand.u32 4294901760, %v2300_v47 }
 0x236   : > { %v2302_v45 = vsub.f32 %v2300_v47, %v2301_v35 }
 0x238   : > { %v2303_v20 = vand.u32 4294901760, %v2302_v45 }
 0x2f8   : > { %v2205_v62 = vpop.f32.mrb[2].mxu0 }
 0x2f9   : > { %v3144_v33 = vpop.f32.mrb[3].mxu0  ;;  %v2210_v41 = vsel %vm2209_vm1, %v2205_v62, -inf }
 0x2fa   : > { %2211 = vmax.xlane.f32.xlu0 %v2210_v41 }
 0x387   : > { %v2212_v53 = vpop.xlane.xlu0 %2211 }
 0x388   : > { %v2213_v34 = vsub.f32 %v2205_v62, %v2212_v53 }
 0x38a   : > { %v2214_v27 = vmul.f32 1.442695, %v2213_v34 }
 0x38c   : > { %3616 = vpow2.f32 %v2214_v27 }
 0x396   : > { %v3617_v54 = vpop.eup %3616 }
 0x397   : > { %v2220_v49 = vsel %vm2209_vm1, %v3617_v54, 0  ;;  %v2216_v26 = vsel %vm2209_vm1, %v3617_v54, 0.0 }
 0x398   : > { %v2288_v10 = vand.u32 4294901760, %v2220_v49  ;;  %2217 = vadd.xlane.f32.xlu0 %v2216_v26 }
 0x39a   : > { %v2289_v28 = vsub.f32 %v2220_v49, %v2288_v10 }
 0x39c   : > { %v2290_v22 = vand.u32 4294901760, %v2289_v28 }
 0x39e   : > { %v2291_v0 = vsub.f32 %v2289_v28, %v2290_v22 }
 0x3a0   : > { %v2292_v13 = vand.u32 4294901760, %v2291_v0 }
 0x3a2   : > { %3148 = vmatmul.mubr.f32.vlgmr.msra.gmra.mrb[2].mxu1 %v2292_v13 }
 0x3a3   : > { %3151 = vmatpush3.msra.mxu1 %v2303_v20  ;;  %3152 = vmatprep.mubr.msk.f32.mxu1 %vm3756_vm0, %v4898_v25 }
 0x3a4   : > { %3155 = vmatprep.subr.mxu1 %v4898_v25 }
 0x3aa   : > { %3153 = vmatmul.mubr.f32.vlgmr.msra.gmra.mrb[2].mxu1 %v2288_v10 }
 0x3ab   : > { %3156 = vmatpush3.msra.mxu1 %v2300_v47  ;;  %3157 = vmatprep.mubr.msk.f32.mxu1 %vm3756_vm0, %v4898_v25 }
 0x3ac   : > { %3160 = vmatprep.subr.mxu1 %v4898_v25 }
 0x3b2   : > { %3158 = vmatmul.mubr.f32.vlgmr.msra.gmra.mrb[2].mxu1 %v2289_v28 }
 0x3b3   : > { %3161 = vmatpush3.msra.mxu1 %v2223_v5  ;;  %3162 = vmatprep.mubr.msk.f32.mxu1 %vm3756_vm0, %v4898_v25 }
 0x3b4   : > { %3165 = vmatprep.subr.mxu1 %v4898_v25 }
 0x3ba   : > { %3163 = vmatmul.mubr.f32.vlgmr.msra.gmra.mrb[2].mxu1 %v2290_v22 }
 0x3bb   : > { %3166 = vmatpush3.msra.mxu1 %v2301_v35  ;;  %3167 = vmatprep.mubr.msk.f32.mxu1 %vm3756_vm0, %v4898_v25 }
 0x3bc   : > { %3170 = vmatprep.subr.mxu1 %v4898_v25 }
 0x3c2   : > { %3168 = vmatmul.mubr.f32.vlgmr.msra.gmra.mrb[2].mxu1 %v2288_v10 }
 0x3c3   : > { %3171 = vmatpush3.msra.mxu1 %v2223_v5  ;;  %3172 = vmatprep.mubr.msk.f32.mxu1 %vm3756_vm0, %v4898_v25 }
 0x3ca   : > { %3173 = vmatmul.mubr.f32.vlgmr.msra.gmra.mrb[2].mxu1 %v2288_v10 }
 0x425   : > { %v2218_v9 = vpop.xlane.xlu0 %2217 }
 0x426   : > { %3618 = vrcp.f32 %v2218_v9 }
 0x430   : > { %v3619_v11 = vpop.eup %3618 }
 0x49d   : > { %v2664_v17 = vpop.f32.mrb[2].mxu1 }
 0x49e   : > { %v2669_v29 = vmul.f32 %v3619_v11, %v2664_v17  ;;  %v3174_v24 = vpop.f32.mrb[3].mxu1 }
 0x4a0   : > { %2670 = vst [vmem:[%s200_s25] sm:$0xff] %v2669_v29 }
 0x4a1   : > { %3691 = shalt.err (!%p3688_p7)
}
 0x4a2   : > { %s3692_s29 = scalar_lea.hbm %s4694_s9, 128  ;;  %s3696_s22 = scalar_lea.hbm %s4741_s3, 256 }
 0x4a3   : > { %p3693_p9 = scmp.ne.s32.totalorder %s4694_s9, %s3692_s29  ;;  %p3697_p0 = scmp.lt.u32.totalorder %s4694_s9, %s4741_s3 }
 0x4a4   : > { %p3698_p11 = scmp.lt.u32.totalorder %s3696_s22, %s3692_s29  ;;  %p3700_p4 = scmp.lt.u32.totalorder %s3692_s29, %s4694_s9 }
 0x4a5   : > { %p3694_p2 = pnand %p3693_p9, %p3869_p12 }
 0x4a6   : > { %p3699_p1 = por %p3698_p11, %p3697_p0 }
 0x4a7   : > { %p3695_p5 = pneg %p3694_p2 }
 0x4a8   : > { %p3701_p6 = por %p3700_p4, %p3699_p1 }
 0x4aa   : > { %p3702_p8 = pnand %p3701_p6, %p3695_p5 }
 0x4ac   : > { %3705 = shalt.err (!%p3702_p8)
}
 0x4ad   : > { %3560 = dma.vmem_to_hbm [thread:$0]  (%p3869_p12), %s4696_s26, 128, %s4694_s9, %s2672_s10  }
 0x4ae PF: > { %s2697_s18 = sand.u32 1, %s3736_s12   ;;  %p4958_p10 = scmp.ne.s32.totalorder %s4829_s19, 0 }
 0x4af   : > { %p4959_p13 = scmp.ge.s32.totalorder %s3748_s15, 2  ;;  %s2698_s20 = scalar_lea.sflag [#allocation4], %s2697_s18 }
 0x4b1   : > { %p3571_p3 = pnand %p4959_p13, %p4958_p10 }
 0x4b3   : > { %3731 = dma.done.wait (!%p3571_p3), %s2698_s20, 128  }
 0x4b4   : > { %3733 = vsyncadd (!%p3571_p3), %s2698_s20, 4294967168  ;;  %p17_p7 = scmp.ge.s32.totalorder %s3834_s24, 4   ;;  %s4960_s12 = smov %s3740_s13 }
 0x4b5   : > { %s4961_s13 = smov %s3744_s14  ;;  %s4962_s14 = smov %s3865_s17 }
 0x4b6   : > { %s4963_s15 = smov %s3834_s24  ;;  %19 = sbr.rel (!%p17_p7) target bundleno = 6 (0x6), region = 81 }
 0x4bd   :  { %2703 = vsyncpa [#allocation3], 1 }
 0x4be   :  { %2705 = vsyncpa [#allocation3 + $0x1], 1 }
 0x4bf   :  { %2706 = vsyncpa [#allocation6], 1 }
 0x4c0   :  { %2707 = vsyncpa [#allocation4], 1 }
 0x4c1   :  { %2709 = vsyncpa [#allocation4 + $0x1], 1 }

</bundles_post_ra>
